<compile_context>
chip_gen: v7x
topology: tpu7x:2x2x1
jax: 0.10.0
libtpu: 0.0.40
codegen_flags: <defaults>
</compile_context>

<pallas_src>
import jax
import jax.numpy as jnp
from jax import lax
from jax.experimental import pallas as pl
from jax.experimental.pallas import tpu as pltpu

# Full f32 matmul precision everywhere (kernel trace and the XLA reference).
jax.config.update("jax_default_matmul_precision", "highest")

# ---- config (mirrors config.config()) ----
EMBEDDING_DIM = 32
NUM_HEADS = 4
MODEL_DIM = 32
HEAD_DIM = MODEL_DIM // NUM_HEADS   # 8
DROPOUT = 0.1                        # identity at inference

_HI = lax.Precision.HIGHEST


def _mha_fused_kernel(q_ref, k_ref, v_ref, wq_ref, wk_ref, wv_ref,
                      wp_ref, b_ref, o_ref):
    # q/k/v_ref: (1, S, E); wq/wk/wv_ref: (E, H*hd) head-major stacked;
    # wp_ref: (M, M) pre-transposed to (in, out); b_ref: (1, M);
    # o_ref: (1, S, M) lane-dense output (heads already concatenated).
    q = q_ref[0]          # (S, E)
    k = k_ref[0]
    v = v_ref[0]

    # Single wide projection per q/k/v: (S, E) @ (E, H*hd) -> (S, M).
    qp = jnp.dot(q, wq_ref[...], preferred_element_type=jnp.float32, precision=_HI)
    kp = jnp.dot(k, wk_ref[...], preferred_element_type=jnp.float32, precision=_HI)
    vp = jnp.dot(v, wv_ref[...], preferred_element_type=jnp.float32, precision=_HI)

    # Per-head attention on lane slices of the stacked projections.
    head_outs = []
    for h in range(NUM_HEADS):          # static, tiny unrolled loop
        lo = h * HEAD_DIM
        hi = lo + HEAD_DIM
        qh = qp[:, lo:hi]               # (S, hd)
        kh = kp[:, lo:hi]
        vh = vp[:, lo:hi]
        # NOTE: reference multiplies by q.shape[-1] (== head_dim); reproduced exactly.
        # dot_general contracting last dims expresses qh @ kh^T without an
        # in-kernel transpose.
        s = lax.dot_general(qh, kh, (((1,), (1,)), ((), ())),
                            preferred_element_type=jnp.float32,
                            precision=_HI) * float(HEAD_DIM)
        # Numerically stable softmax with an EXACT denominator (the logits are
        # scaled by head_dim, so approximate reciprocals are not accurate enough).
        s = s - jnp.max(s, axis=-1, keepdims=True)
        e = jnp.exp(s)
        w = e / jnp.sum(e, axis=-1, keepdims=True)
        head_outs.append(jnp.dot(w, vh, preferred_element_type=jnp.float32,
                                 precision=_HI))

    # Heads land in their final concatenated columns: (S, M), lane-dense.
    x = jnp.concatenate(head_outs, axis=-1)

    # Output projection with bias (wp already (in, out): no in-kernel transpose).
    o_ref[0] = jnp.dot(x, wp_ref[...], preferred_element_type=jnp.float32,
                       precision=_HI) + b_ref[...]


def multihead_attention(q, k, v, wq, wk, wv, w_proj, b_proj):
    """q/k/v: (B, S, E); wq/wk/wv: (H, E, hd); w_proj: (M, M) torch (out, in); b_proj: (1, M)."""
    B, S, E = q.shape
    H, _, hd = wq.shape
    M = H * hd

    # One-time host-side weight re-layouts (tiny, done once per call):
    #   per-head (H, E, hd) -> lane-dense head-major (E, H*hd); w_proj -> (in, out).
    wq_s = jnp.transpose(wq, (1, 0, 2)).reshape(E, M)
    wk_s = jnp.transpose(wk, (1, 0, 2)).reshape(E, M)
    wv_s = jnp.transpose(wv, (1, 0, 2)).reshape(E, M)
    wp_t = w_proj.T

    out = pl.pallas_call(
        _mha_fused_kernel,
        out_shape=jax.ShapeDtypeStruct((B, S, M), jnp.float32),
        grid_spec=pltpu.PrefetchScalarGridSpec(
            num_scalar_prefetch=0,
            grid=(B,),
            in_specs=[
                pl.BlockSpec((1, S, E), lambda b: (b, 0, 0)),
                pl.BlockSpec((1, S, E), lambda b: (b, 0, 0)),
                pl.BlockSpec((1, S, E), lambda b: (b, 0, 0)),
                pl.BlockSpec((E, M), lambda b: (0, 0)),   # weights: whole, VMEM-resident
                pl.BlockSpec((E, M), lambda b: (0, 0)),
                pl.BlockSpec((E, M), lambda b: (0, 0)),
                pl.BlockSpec((M, M), lambda b: (0, 0)),
                pl.BlockSpec((1, M), lambda b: (0, 0)),
            ],
            out_specs=pl.BlockSpec((1, S, M), lambda b: (b, 0, 0)),
        ),
        # grid=(B,) parallel: shards batch across the two v7x TensorCores too.
        compiler_params=pltpu.CompilerParams(dimension_semantics=("parallel",)),
    )(q, k, v, wq_s, wk_s, wv_s, wp_t, b_proj)
    return out


if __name__ == "__main__":
    B, S = 2, 8
    key = jax.random.PRNGKey(0)
    kq, kk, kv, kwq, kwk, kwv, kwp, kbp = jax.random.split(key, 8)

    q = jax.random.normal(kq, (B, S, EMBEDDING_DIM), dtype=jnp.float32)
    k = jax.random.normal(kk, (B, S, EMBEDDING_DIM), dtype=jnp.float32)
    v = jax.random.normal(kv, (B, S, EMBEDDING_DIM), dtype=jnp.float32)

    # Deterministic parameter init (shapes match the torch module's __init__).
    scale_in = 1.0 / jnp.sqrt(jnp.float32(EMBEDDING_DIM))
    wq = jax.random.normal(kwq, (NUM_HEADS, EMBEDDING_DIM, HEAD_DIM), jnp.float32) * scale_in
    wk = jax.random.normal(kwk, (NUM_HEADS, EMBEDDING_DIM, HEAD_DIM), jnp.float32) * scale_in
    wv = jax.random.normal(kwv, (NUM_HEADS, EMBEDDING_DIM, HEAD_DIM), jnp.float32) * scale_in
    scale_m = 1.0 / jnp.sqrt(jnp.float32(MODEL_DIM))
    w_proj = jax.random.normal(kwp, (MODEL_DIM, MODEL_DIM), jnp.float32) * scale_m  # (out, in)
    b_proj = (jax.random.normal(kbp, (1, MODEL_DIM), jnp.float32) * scale_m)

    out = multihead_attention(q, k, v, wq, wk, wv, w_proj, b_proj)
    jax.block_until_ready(out)

    # quick sanity check against a pure-JAX reference (full f32 precision)
    def ref(q, k, v):
        outs = []
        for h in range(NUM_HEADS):
            qp = jnp.dot(q, wq[h], precision=_HI)
            kp = jnp.dot(k, wk[h], precision=_HI)
            vp = jnp.dot(v, wv[h], precision=_HI)
            s = jnp.einsum("bqd,bkd->bqk", qp, kp, precision=_HI) * float(HEAD_DIM)
            w = jax.nn.softmax(s, axis=-1)
            outs.append(jnp.einsum("bqk,bkd->bqd", w, vp, precision=_HI))
        x = jnp.concatenate(outs, axis=-1)
        return jnp.dot(x, w_proj.T, precision=_HI) + b_proj

    expected = ref(q, k, v)
    assert out.shape == (B, S, MODEL_DIM)
    assert jnp.allclose(out, expected, atol=5e-3, rtol=5e-3), (
        float(jnp.max(jnp.abs(out - expected))))
    print("KERNEL_OK")
</pallas_src>

<mosaic_0001>
module attributes {stable_mosaic.version = 11 : i64} {
  func.func @_mha_fused_kernel(%arg0: i32, %arg1: memref<1x8x32xf32, #tpu.memory_space<vmem>>, %arg2: memref<1x8x32xf32, #tpu.memory_space<vmem>>, %arg3: memref<1x8x32xf32, #tpu.memory_space<vmem>>, %arg4: memref<32x32xf32, #tpu.memory_space<vmem>>, %arg5: memref<32x32xf32, #tpu.memory_space<vmem>>, %arg6: memref<32x32xf32, #tpu.memory_space<vmem>>, %arg7: memref<32x32xf32, #tpu.memory_space<vmem>>, %arg8: memref<1x32xf32, #tpu.memory_space<vmem>>, %arg9: memref<1x8x32xf32, #tpu.memory_space<vmem>>) attributes {dimension_semantics = [#tpu.dimension_semantics<parallel>], iteration_bounds = array<i64: 2>, scalar_prefetch = 0 : i64, scratch_operands = 0 : i64, tpu.core_type = #tpu.core_type<tc>, window_params = [{transform_indices = @transform_0, window_bounds = array<i64: 1, 8, 32>}, {transform_indices = @transform_1, window_bounds = array<i64: 1, 8, 32>}, {transform_indices = @transform_2, window_bounds = array<i64: 1, 8, 32>}, {pipeline_mode = #tpu.pipeline_mode<synchronous>, transform_indices = @transform_3, window_bounds = array<i64: 32, 32>}, {pipeline_mode = #tpu.pipeline_mode<synchronous>, transform_indices = @transform_4, window_bounds = array<i64: 32, 32>}, {pipeline_mode = #tpu.pipeline_mode<synchronous>, transform_indices = @transform_5, window_bounds = array<i64: 32, 32>}, {pipeline_mode = #tpu.pipeline_mode<synchronous>, transform_indices = @transform_6, window_bounds = array<i64: 32, 32>}, {pipeline_mode = #tpu.pipeline_mode<synchronous>, transform_indices = @transform_7, window_bounds = array<i64: 1, 32>}, {transform_indices = @transform_8, window_bounds = array<i64: 1, 8, 32>}]} {
    %c0 = arith.constant 0 : index
    %c0_0 = arith.constant 0 : index
    %c0_1 = arith.constant 0 : index
    %0 = vector.load %arg1[%c0, %c0_0, %c0_1] : memref<1x8x32xf32, #tpu.memory_space<vmem>>, vector<1x8x32xf32>
    %1 = vector.shape_cast %0 : vector<1x8x32xf32> to vector<8x32xf32>
    %c0_2 = arith.constant 0 : index
    %c0_3 = arith.constant 0 : index
    %c0_4 = arith.constant 0 : index
    %2 = vector.load %arg2[%c0_2, %c0_3, %c0_4] : memref<1x8x32xf32, #tpu.memory_space<vmem>>, vector<1x8x32xf32>
    %3 = vector.shape_cast %2 : vector<1x8x32xf32> to vector<8x32xf32>
    %c0_5 = arith.constant 0 : index
    %c0_6 = arith.constant 0 : index
    %c0_7 = arith.constant 0 : index
    %4 = vector.load %arg3[%c0_5, %c0_6, %c0_7] : memref<1x8x32xf32, #tpu.memory_space<vmem>>, vector<1x8x32xf32>
    %5 = vector.shape_cast %4 : vector<1x8x32xf32> to vector<8x32xf32>
    %c0_8 = arith.constant 0 : index
    %c0_9 = arith.constant 0 : index
    %6 = vector.load %arg4[%c0_8, %c0_9] : memref<32x32xf32, #tpu.memory_space<vmem>>, vector<32x32xf32>
    %cst = arith.constant dense<0.000000e+00> : vector<8x32xf32>
    %7 = tpu.matmul %1, %6, %cst {dimension_numbers = #tpu.dot_dimension_numbers<[1], [0], [0], [1], [0, 0, 1, 1], [], []>, precision = #tpu.contract_precision<fp32>} : vector<8x32xf32>, vector<32x32xf32>, vector<8x32xf32> -> vector<8x32xf32>
    %c0_10 = arith.constant 0 : index
    %c0_11 = arith.constant 0 : index
    %8 = vector.load %arg5[%c0_10, %c0_11] : memref<32x32xf32, #tpu.memory_space<vmem>>, vector<32x32xf32>
    %cst_12 = arith.constant dense<0.000000e+00> : vector<8x32xf32>
    %9 = tpu.matmul %3, %8, %cst_12 {dimension_numbers = #tpu.dot_dimension_numbers<[1], [0], [0], [1], [0, 0, 1, 1], [], []>, precision = #tpu.contract_precision<fp32>} : vector<8x32xf32>, vector<32x32xf32>, vector<8x32xf32> -> vector<8x32xf32>
    %c0_13 = arith.constant 0 : index
    %c0_14 = arith.constant 0 : index
    %10 = vector.load %arg6[%c0_13, %c0_14] : memref<32x32xf32, #tpu.memory_space<vmem>>, vector<32x32xf32>
    %cst_15 = arith.constant dense<0.000000e+00> : vector<8x32xf32>
    %11 = tpu.matmul %5, %10, %cst_15 {dimension_numbers = #tpu.dot_dimension_numbers<[1], [0], [0], [1], [0, 0, 1, 1], [], []>, precision = #tpu.contract_precision<fp32>} : vector<8x32xf32>, vector<32x32xf32>, vector<8x32xf32> -> vector<8x32xf32>
    %12 = vector.extract_strided_slice %7 {offsets = [0, 0], sizes = [8, 8], strides = [1, 1]} : vector<8x32xf32> to vector<8x8xf32>
    %13 = vector.extract_strided_slice %9 {offsets = [0, 0], sizes = [8, 8], strides = [1, 1]} : vector<8x32xf32> to vector<8x8xf32>
    %14 = vector.extract_strided_slice %11 {offsets = [0, 0], sizes = [8, 8], strides = [1, 1]} : vector<8x32xf32> to vector<8x8xf32>
    %cst_16 = arith.constant dense<0.000000e+00> : vector<8x8xf32>
    %15 = tpu.matmul %12, %13, %cst_16 {dimension_numbers = #tpu.dot_dimension_numbers<[1], [1], [0], [0], [0, 0, 1, 0], [], []>, precision = #tpu.contract_precision<fp32>} : vector<8x8xf32>, vector<8x8xf32>, vector<8x8xf32> -> vector<8x8xf32>
    %cst_17 = arith.constant 8.000000e+00 : f32
    %16 = vector.broadcast %cst_17 : f32 to vector<8x8xf32>
    %17 = arith.mulf %15, %16 : vector<8x8xf32>
    %cst_18 = arith.constant dense<0xFF800000> : vector<8xf32>
    %18 = vector.multi_reduction <maximumf>, %17, %cst_18 [1] : vector<8x8xf32> to vector<8xf32>
    %19 = vector.shape_cast %18 : vector<8xf32> to vector<8x1xf32>
    %20 = vector.broadcast %19 : vector<8x1xf32> to vector<8x8xf32>
    %21 = arith.subf %17, %20 : vector<8x8xf32>
    %22 = math.exp %21 : vector<8x8xf32>
    %cst_19 = arith.constant dense<0.000000e+00> : vector<8xf32>
    %23 = vector.multi_reduction <add>, %22, %cst_19 [1] : vector<8x8xf32> to vector<8xf32>
    %24 = vector.shape_cast %23 : vector<8xf32> to vector<8x1xf32>
    %25 = vector.broadcast %24 : vector<8x1xf32> to vector<8x8xf32>
    %26 = arith.divf %22, %25 : vector<8x8xf32>
    %cst_20 = arith.constant dense<0.000000e+00> : vector<8x8xf32>
    %27 = tpu.matmul %26, %14, %cst_20 {dimension_numbers = #tpu.dot_dimension_numbers<[1], [0], [0], [1], [0, 0, 1, 1], [], []>, precision = #tpu.contract_precision<fp32>} : vector<8x8xf32>, vector<8x8xf32>, vector<8x8xf32> -> vector<8x8xf32>
    %28 = vector.extract_strided_slice %7 {offsets = [0, 8], sizes = [8, 8], strides = [1, 1]} : vector<8x32xf32> to vector<8x8xf32>
    %29 = vector.extract_strided_slice %9 {offsets = [0, 8], sizes = [8, 8], strides = [1, 1]} : vector<8x32xf32> to vector<8x8xf32>
    %30 = vector.extract_strided_slice %11 {offsets = [0, 8], sizes = [8, 8], strides = [1, 1]} : vector<8x32xf32> to vector<8x8xf32>
    %cst_21 = arith.constant dense<0.000000e+00> : vector<8x8xf32>
    %31 = tpu.matmul %28, %29, %cst_21 {dimension_numbers = #tpu.dot_dimension_numbers<[1], [1], [0], [0], [0, 0, 1, 0], [], []>, precision = #tpu.contract_precision<fp32>} : vector<8x8xf32>, vector<8x8xf32>, vector<8x8xf32> -> vector<8x8xf32>
    %cst_22 = arith.constant 8.000000e+00 : f32
    %32 = vector.broadcast %cst_22 : f32 to vector<8x8xf32>
    %33 = arith.mulf %31, %32 : vector<8x8xf32>
    %cst_23 = arith.constant dense<0xFF800000> : vector<8xf32>
    %34 = vector.multi_reduction <maximumf>, %33, %cst_23 [1] : vector<8x8xf32> to vector<8xf32>
    %35 = vector.shape_cast %34 : vector<8xf32> to vector<8x1xf32>
    %36 = vector.broadcast %35 : vector<8x1xf32> to vector<8x8xf32>
    %37 = arith.subf %33, %36 : vector<8x8xf32>
    %38 = math.exp %37 : vector<8x8xf32>
    %cst_24 = arith.constant dense<0.000000e+00> : vector<8xf32>
    %39 = vector.multi_reduction <add>, %38, %cst_24 [1] : vector<8x8xf32> to vector<8xf32>
    %40 = vector.shape_cast %39 : vector<8xf32> to vector<8x1xf32>
    %41 = vector.broadcast %40 : vector<8x1xf32> to vector<8x8xf32>
    %42 = arith.divf %38, %41 : vector<8x8xf32>
    %cst_25 = arith.constant dense<0.000000e+00> : vector<8x8xf32>
    %43 = tpu.matmul %42, %30, %cst_25 {dimension_numbers = #tpu.dot_dimension_numbers<[1], [0], [0], [1], [0, 0, 1, 1], [], []>, precision = #tpu.contract_precision<fp32>} : vector<8x8xf32>, vector<8x8xf32>, vector<8x8xf32> -> vector<8x8xf32>
    %44 = vector.extract_strided_slice %7 {offsets = [0, 16], sizes = [8, 8], strides = [1, 1]} : vector<8x32xf32> to vector<8x8xf32>
    %45 = vector.extract_strided_slice %9 {offsets = [0, 16], sizes = [8, 8], strides = [1, 1]} : vector<8x32xf32> to vector<8x8xf32>
    %46 = vector.extract_strided_slice %11 {offsets = [0, 16], sizes = [8, 8], strides = [1, 1]} : vector<8x32xf32> to vector<8x8xf32>
    %cst_26 = arith.constant dense<0.000000e+00> : vector<8x8xf32>
    %47 = tpu.matmul %44, %45, %cst_26 {dimension_numbers = #tpu.dot_dimension_numbers<[1], [1], [0], [0], [0, 0, 1, 0], [], []>, precision = #tpu.contract_precision<fp32>} : vector<8x8xf32>, vector<8x8xf32>, vector<8x8xf32> -> vector<8x8xf32>
    %cst_27 = arith.constant 8.000000e+00 : f32
    %48 = vector.broadcast %cst_27 : f32 to vector<8x8xf32>
    %49 = arith.mulf %47, %48 : vector<8x8xf32>
    %cst_28 = arith.constant dense<0xFF800000> : vector<8xf32>
    %50 = vector.multi_reduction <maximumf>, %49, %cst_28 [1] : vector<8x8xf32> to vector<8xf32>
    %51 = vector.shape_cast %50 : vector<8xf32> to vector<8x1xf32>
    %52 = vector.broadcast %51 : vector<8x1xf32> to vector<8x8xf32>
    %53 = arith.subf %49, %52 : vector<8x8xf32>
    %54 = math.exp %53 : vector<8x8xf32>
    %cst_29 = arith.constant dense<0.000000e+00> : vector<8xf32>
    %55 = vector.multi_reduction <add>, %54, %cst_29 [1] : vector<8x8xf32> to vector<8xf32>
    %56 = vector.shape_cast %55 : vector<8xf32> to vector<8x1xf32>
    %57 = vector.broadcast %56 : vector<8x1xf32> to vector<8x8xf32>
    %58 = arith.divf %54, %57 : vector<8x8xf32>
    %cst_30 = arith.constant dense<0.000000e+00> : vector<8x8xf32>
    %59 = tpu.matmul %58, %46, %cst_30 {dimension_numbers = #tpu.dot_dimension_numbers<[1], [0], [0], [1], [0, 0, 1, 1], [], []>, precision = #tpu.contract_precision<fp32>} : vector<8x8xf32>, vector<8x8xf32>, vector<8x8xf32> -> vector<8x8xf32>
    %60 = vector.extract_strided_slice %7 {offsets = [0, 24], sizes = [8, 8], strides = [1, 1]} : vector<8x32xf32> to vector<8x8xf32>
    %61 = vector.extract_strided_slice %9 {offsets = [0, 24], sizes = [8, 8], strides = [1, 1]} : vector<8x32xf32> to vector<8x8xf32>
    %62 = vector.extract_strided_slice %11 {offsets = [0, 24], sizes = [8, 8], strides = [1, 1]} : vector<8x32xf32> to vector<8x8xf32>
    %cst_31 = arith.constant dense<0.000000e+00> : vector<8x8xf32>
    %63 = tpu.matmul %60, %61, %cst_31 {dimension_numbers = #tpu.dot_dimension_numbers<[1], [1], [0], [0], [0, 0, 1, 0], [], []>, precision = #tpu.contract_precision<fp32>} : vector<8x8xf32>, vector<8x8xf32>, vector<8x8xf32> -> vector<8x8xf32>
    %cst_32 = arith.constant 8.000000e+00 : f32
    %64 = vector.broadcast %cst_32 : f32 to vector<8x8xf32>
    %65 = arith.mulf %63, %64 : vector<8x8xf32>
    %cst_33 = arith.constant dense<0xFF800000> : vector<8xf32>
    %66 = vector.multi_reduction <maximumf>, %65, %cst_33 [1] : vector<8x8xf32> to vector<8xf32>
    %67 = vector.shape_cast %66 : vector<8xf32> to vector<8x1xf32>
    %68 = vector.broadcast %67 : vector<8x1xf32> to vector<8x8xf32>
    %69 = arith.subf %65, %68 : vector<8x8xf32>
    %70 = math.exp %69 : vector<8x8xf32>
    %cst_34 = arith.constant dense<0.000000e+00> : vector<8xf32>
    %71 = vector.multi_reduction <add>, %70, %cst_34 [1] : vector<8x8xf32> to vector<8xf32>
    %72 = vector.shape_cast %71 : vector<8xf32> to vector<8x1xf32>
    %73 = vector.broadcast %72 : vector<8x1xf32> to vector<8x8xf32>
    %74 = arith.divf %70, %73 : vector<8x8xf32>
    %cst_35 = arith.constant dense<0.000000e+00> : vector<8x8xf32>
    %75 = tpu.matmul %74, %62, %cst_35 {dimension_numbers = #tpu.dot_dimension_numbers<[1], [0], [0], [1], [0, 0, 1, 1], [], []>, precision = #tpu.contract_precision<fp32>} : vector<8x8xf32>, vector<8x8xf32>, vector<8x8xf32> -> vector<8x8xf32>
    %76 = tpu.concatenate %27, %43, %59, %75 in 1 : vector<8x8xf32>, vector<8x8xf32>, vector<8x8xf32>, vector<8x8xf32> -> vector<8x32xf32>
    %c0_36 = arith.constant 0 : index
    %c0_37 = arith.constant 0 : index
    %77 = vector.load %arg7[%c0_36, %c0_37] : memref<32x32xf32, #tpu.memory_space<vmem>>, vector<32x32xf32>
    %cst_38 = arith.constant dense<0.000000e+00> : vector<8x32xf32>
    %78 = tpu.matmul %76, %77, %cst_38 {dimension_numbers = #tpu.dot_dimension_numbers<[1], [0], [0], [1], [0, 0, 1, 1], [], []>, precision = #tpu.contract_precision<fp32>} : vector<8x32xf32>, vector<32x32xf32>, vector<8x32xf32> -> vector<8x32xf32>
    %c0_39 = arith.constant 0 : index
    %c0_40 = arith.constant 0 : index
    %79 = vector.load %arg8[%c0_39, %c0_40] : memref<1x32xf32, #tpu.memory_space<vmem>>, vector<1x32xf32>
    %80 = vector.broadcast %79 : vector<1x32xf32> to vector<8x32xf32>
    %81 = arith.addf %78, %80 : vector<8x32xf32>
    %c0_41 = arith.constant 0 : index
    %c0_42 = arith.constant 0 : index
    %c0_43 = arith.constant 0 : index
    %82 = vector.load %arg9[%c0_41, %c0_42, %c0_43] : memref<1x8x32xf32, #tpu.memory_space<vmem>>, vector<1x8x32xf32>
    %83 = vector.shape_cast %82 : vector<1x8x32xf32> to vector<8x32xf32>
    %84 = vector.shape_cast %81 : vector<8x32xf32> to vector<1x8x32xf32>
    tpu.vector_store %arg9[%c0_41, %c0_42, %c0_43], %84 {strides = array<i32>} : memref<1x8x32xf32, #tpu.memory_space<vmem>>, vector<1x8x32xf32>,
    return
  }
  func.func @transform_0(%arg0: i32) -> (i32, i32, i32) {
    %c0_i32 = arith.constant 0 : i32
    %c0_i32_0 = arith.constant 0 : i32
    %c0_i32_1 = arith.constant 0 : i32
    return %arg0, %c0_i32, %c0_i32_0 : i32, i32, i32
  }
  func.func @transform_1(%arg0: i32) -> (i32, i32, i32) {
    %c0_i32 = arith.constant 0 : i32
    %c0_i32_0 = arith.constant 0 : i32
    %c0_i32_1 = arith.constant 0 : i32
    return %arg0, %c0_i32, %c0_i32_0 : i32, i32, i32
  }
  func.func @transform_2(%arg0: i32) -> (i32, i32, i32) {
    %c0_i32 = arith.constant 0 : i32
    %c0_i32_0 = arith.constant 0 : i32
    %c0_i32_1 = arith.constant 0 : i32
    return %arg0, %c0_i32, %c0_i32_0 : i32, i32, i32
  }
  func.func @transform_3(%arg0: i32) -> (i32, i32) {
    %c0_i32 = arith.constant 0 : i32
    %c0_i32_0 = arith.constant 0 : i32
    %c0_i32_1 = arith.constant 0 : i32
    return %c0_i32, %c0_i32_0 : i32, i32
  }
  func.func @transform_4(%arg0: i32) -> (i32, i32) {
    %c0_i32 = arith.constant 0 : i32
    %c0_i32_0 = arith.constant 0 : i32
    %c0_i32_1 = arith.constant 0 : i32
    return %c0_i32, %c0_i32_0 : i32, i32
  }
  func.func @transform_5(%arg0: i32) -> (i32, i32) {
    %c0_i32 = arith.constant 0 : i32
    %c0_i32_0 = arith.constant 0 : i32
    %c0_i32_1 = arith.constant 0 : i32
    return %c0_i32, %c0_i32_0 : i32, i32
  }
  func.func @transform_6(%arg0: i32) -> (i32, i32) {
    %c0_i32 = arith.constant 0 : i32
    %c0_i32_0 = arith.constant 0 : i32
    %c0_i32_1 = arith.constant 0 : i32
    return %c0_i32, %c0_i32_0 : i32, i32
  }
  func.func @transform_7(%arg0: i32) -> (i32, i32) {
    %c0_i32 = arith.constant 0 : i32
    %c0_i32_0 = arith.constant 0 : i32
    %c0_i32_1 = arith.constant 0 : i32
    return %c0_i32, %c0_i32_0 : i32, i32
  }
  func.func @transform_8(%arg0: i32) -> (i32, i32, i32) {
    %c0_i32 = arith.constant 0 : i32
    %c0_i32_0 = arith.constant 0 : i32
    %c0_i32_1 = arith.constant 0 : i32
    return %arg0, %c0_i32, %c0_i32_0 : i32, i32, i32
  }
}

</mosaic_0001>

<bundles_post_ra>
// kernel: tpu_custom_call.1
= control target key start
LH: loop header
LB: loop body
LE: loop exit
PB: predicated region body
PF: predicated region fallthrough
CT: control target
= control target key end

     0   :  { %s8495_s0 = inlined_call_operand.hbm [shape: f32[2,8,32], index: 0, kind: input, shape index: {}]   ;;  %s8496_s1 = inlined_call_operand.hbm [shape: f32[2,8,32], index: 1, kind: input, shape index: {}]   ;;  %s8497_s2 = inlined_call_operand.hbm [shape: f32[2,8,32], index: 2, kind: input, shape index: {}]   ;;  %s8498_s3 = inlined_call_operand.hbm [shape: f32[32,32], index: 3, kind: input, shape index: {}]   ;;  %s8499_s4 = inlined_call_operand.hbm [shape: f32[32,32], index: 4, kind: input, shape index: {}]   ;;  %s8500_s5 = inlined_call_operand.hbm [shape: f32[32,32], index: 5, kind: input, shape index: {}]   ;;  %s8501_s6 = inlined_call_operand.hbm [shape: f32[32,32], index: 6, kind: input, shape index: {}]   ;;  %s8502_s7 = inlined_call_operand.vmem [shape: f32[1,32], index: 7, kind: input, shape index: {}]   ;;  %s8503_s8 = inlined_call_operand.hbm [shape: f32[2,8,32], index: 8, kind: output, shape index: {}]  }
   0x1   :  { %8527 = sst [smem:[#allocation25_spill]] %s8496_s1 }
   0x2   :  { %8528 = sst [smem:[#allocation26_spill]] %s8498_s3 }
   0x3   :  { %8529 = sst [smem:[#allocation27_spill]] %s8500_s5 }
   0x4   :  { %8530 = sst [smem:[#allocation28_spill]] %s8502_s7 }
   0x5   :  { %8531 = sst [smem:[#allocation29_spill]] %s8503_s8 }
   0x6   :  { %13 = vsyncpa [#allocation3], 0 }
   0x7   :  { %15 = vsyncpa [#allocation3 + $0x1], 0 }
   0x8   :  { %16 = vsyncpa [#allocation6], 0 }
   0x9   :  { %18 = vsyncpa [#allocation6 + $0x1], 0 }
   0xa   :  { %19 = vsyncpa [#allocation9], 0 }
   0xb   :  { %20 = vsyncpa [#allocation12], 0 }
   0xc   :  { %21 = vsyncpa [#allocation4], 0 }
   0xd   :  { %23 = vsyncpa [#allocation4 + $0x1], 0  ;;  %s7762_s27 = smov 0   ;;  %s7764_s28 = smov 0  }
   0xe   :  { %s7766_s29 = smov 0   ;;  %s7768_s30 = smov 0  }
   0xf LB: > { %8532 = sst [smem:[#allocation20_spill]] %s7684_s27  ;;  %s7698_s9 = smov [#allocation8]   ;;  %s7696_s30 = sphi %s7768_s30, %s8570_s30   ;;  %s7692_s29 = sphi %s7766_s29, %s8574_s29   ;;  %s7688_s28 = sphi %s7764_s28, %s8573_s28   ;;  %s7684_s27 = sphi %s7762_s27, %s8572_s27  }
  0x10   : > { %8533 = sst [smem:[#allocation21_spill]] %s7696_s30  ;;  %s255_s10 = sshll.u32 %s7698_s9, 4  ;;  %s7788_s10 = int_to_ptr.vmem [resolvable:$true] %s255_s10 }
  0x11   : > { %s7783_s11 = sadd.s32 4294967295, %s7696_s30   ;;  %p6282_p0 = scmp.ge.s32.totalorder %s7696_s30, 1 }
  0x12   : > { %p8514_p1 = scmp.eq.s32.totalorder %s7783_s11, 0  ;;  %p243_p2 = scmp.lt.s32.totalorder %s7696_s30, 3 }
  0x13   : > { %s7699_s13 = smov [#allocation11]   ;;  %s8536_s3 = sld [smem:[#allocation26_spill]] }
  0x14   : > { %p7790_p3 = pnand %p6282_p0, %p243_p2  ;;  %s281_s14 = sshll.u32 %s7699_s13, 4  ;;  %s7803_s14 = int_to_ptr.vmem [resolvable:$true] %s281_s14 }
  0x16   : > { %s8534_s12 = scalar_select %p7790_p3, 1, 0 }
  0x17   : > { %p7316_p5 = pneg %p7790_p3 }
  0x19   : > { %p7799_p6 = pnand %p7316_p5, %p8514_p1  ;;  %s7416_s18 = scalar_lea.hbm %s8536_s3, 512 }
  0x1a   : > { %p7417_p7 = scmp.ne.s32.totalorder %s8536_s3, %s7416_s18  ;;  %p7423_p11 = scmp.lt.u32.totalorder %s7416_s18, %s8536_s3 }
  0x1b   : > { %s8535_s15 = scalar_select %p7799_p6, 1, 0 }
  0x1c   : > { %p7813_p8 = pneg %p7799_p6 }
  0x1e   : > { %s8537_s21 = scalar_select %p7813_p8, 1, 0 }
  0x1f   : > { %p7419_p9 = pnand %p7813_p8, %p7417_p7 }
  0x21   : > { %p7420_p10 = pneg %p7419_p9 }
  0x23   : > { %p7425_p12 = pnand %p7423_p11, %p7420_p10 }
  0x25   : > { %7428 = shalt.err (!%p7425_p12)
}
  0x26   : > { %s7429_s24 = scalar_lea.vmem %s7788_s10, 512  ;;  %p7437_p5 = scmp.lt.s32.totalorder %s7788_s10, %s7788_s10 }
  0x27   : > { %p7430_p13 = scmp.ne.s32.totalorder %s7788_s10, %s7429_s24  ;;  %p7438_p4 = scmp.lt.s32.totalorder %s7429_s24, %s7429_s24 }
  0x29   : > { %p7432_p0 = pnand %p7430_p13, %p7813_p8  ;;  %p7439_p7 = por %p7438_p4, %p7437_p5 }
  0x2b   : > { %p7433_p2 = pneg %p7432_p0 }
  0x2d   : > { %p7440_p9 = pnand %p7439_p7, %p7433_p2 }
  0x2f   : > { %7443 = shalt.err (!%p7440_p9)
}
  0x30   : > { %s8505_s25 = smov 128   ;;  %s8508_s26 = smov 8  }
  0x31   : > { %7319 = dma.hbm_to_vmem [thread:$0]  (!%p7799_p6), %s8536_s3, 512, %s7788_s10, [#allocation9], %s8505_s25, %s8505_s25, %s8508_s26  }
  0x32   : > { %s8538_s5 = sld [smem:[#allocation27_spill]] }
  0x38   : > { %s7444_s18 = scalar_lea.hbm %s8538_s5, 512 }
  0x39   : > { %p7445_p4 = scmp.ne.s32.totalorder %s8538_s5, %s7444_s18  ;;  %p7451_p12 = scmp.lt.u32.totalorder %s7444_s18, %s8538_s5 }
  0x3b   : > { %p7447_p10 = pnand %p7445_p4, %p7813_p8 }
  0x3d   : > { %p7448_p11 = pneg %p7447_p10 }
  0x3f   : > { %p7453_p13 = pnand %p7451_p12, %p7448_p11 }
  0x41   : > { %7456 = shalt.err (!%p7453_p13)
}
  0x42   : > { %s7457_s10 = scalar_lea.vmem %s7803_s14, 512  ;;  %p7465_p7 = scmp.lt.s32.totalorder %s7803_s14, %s7803_s14 }
  0x43   : > { %p7458_p0 = scmp.ne.s32.totalorder %s7803_s14, %s7457_s10  ;;  %p7466_p9 = scmp.lt.s32.totalorder %s7457_s10, %s7457_s10 }
  0x45   : > { %p7460_p2 = pnand %p7458_p0, %p7813_p8  ;;  %p7467_p4 = por %p7466_p9, %p7465_p7 }
  0x47   : > { %p7461_p5 = pneg %p7460_p2 }
  0x49   : > { %p7468_p10 = pnand %p7467_p4, %p7461_p5 }
  0x4b   : > { %7471 = shalt.err (!%p7468_p10)
}
  0x4c   : > { %7325 = dma.hbm_to_vmem [thread:$0]  (!%p7799_p6), %s8538_s5, 512, %s7803_s14, [#allocation12], %s8505_s25, %s8505_s25, %s8508_s26  }
  0x4d   : > { %s6281_s13 = sadd.s32 4294967294, %s7696_s30   ;;  %s7865_s16 = sadd.s32 1, %s7696_s30  }
  0x4e   : > { %8539 = sst [smem:[#allocation22_spill]] %s7865_s16  ;;  %s33_s17 = ssub.s32 %s7696_s30, %s7865_s16 }
  0x4f   : > { %s36_s18 = sadd.s32 1, %s7692_s29  ;;  %p34_p11 = scmp.eq.s32.totalorder %s33_s17, 0 }
  0x50   : > { %p43_p12 = scmp.ne.s32.totalorder %s7692_s29, %s7688_s28  ;;  %p44_p13 = scmp.eq.s32.totalorder %s7696_s30, 0 }
  0x51   : > { %p49_p0 = scmp.ne.s32.totalorder %s7688_s28, %s7684_s27  ;;  %p230_p7 = scmp.eq.s32.totalorder %s7783_s11, 1 }
  0x52   : > { %s7876_s19 = scalar_select %p34_p11, %s7692_s29, %s36_s18  }
  0x53   : > { %p45_p2 = por %p44_p13, %p43_p12  ;;  %p7880_p5 = por %p8514_p1, %p49_p0 }
  0x54   : > { %8540 = sst [smem:[#allocation23_spill]] %s7876_s19  ;;  %p236_p9 = scmp.eq.s32.totalorder %s6281_s13, 1 }
  0x55   : > { %s8541_s20 = scalar_select %p7880_p5, 1, 0 }
  0x56   : > { %p7347_p4 = scmp.lt.s32.totalorder %s7696_s30, 2  ;;  %s8507_s14 = sand.u32 1, %s7692_s29  }
  0x57   : > { %p7887_p10 = por %p230_p7, %p43_p12  ;;  %p7891_p3 = por %p236_p9, %p49_p0 }
  0x58   : > { %s7897_s10 = sshll.u32 %s8507_s14, 3  ;;  %s7900_s24 = sshll.u32 %s7696_s30, 7 }
  0x59   : > { %s8542_s22 = scalar_select %p7887_p10, 1, 0 }
  0x5a   : > { %s8543_s23 = scalar_select %p7891_p3, 1, 0 }
  0x5b   : > { %p7902_p11 = pnand %p7347_p4, %p45_p2  ;;  %s329_s13 = sand.u32 1, %s7696_s30  }
  0x5c   : > { %8544 = sst [smem:[#allocation24_spill]] %s8543_s23  ;;  %s8546_s1 = sld [smem:[#allocation25_spill]] }
  0x5d   : > { %s8545_s9 = scalar_select %p7902_p11, 1, 0 }
  0x5e   : > { %s333_s14 = scalar_lea.vmem [#allocation5], %s7897_s10  ;;  %s7702_s3 = smov [#allocation10]  }
  0x5f   : > { %s340_s26 = sshll.u32 %s333_s14, 4  ;;  %s7916_s5 = sshll.u32 %s7702_s3, 4  ;;  %s7914_s26 = int_to_ptr.vmem [resolvable:$true] %s340_s26  ;;  %s269_s5 = int_to_ptr.vmem [resolvable:$true] %s7916_s5 }
  0x60   : > { %s7918_s19 = scalar_lea.sflag [#allocation6], %s329_s13  ;;  %p7924_p13 = pneg %p7902_p11 }
  0x62   : > { %s7911_s25 = scalar_lea.hbm %s8546_s1, %s7900_s24  ;;  %s7477_s30 = scalar_lea.hbm %s8546_s1, 256 }
  0x63   : > { %s7472_s16 = scalar_lea.hbm %s7911_s25, 128  ;;  %p7478_p7 = scmp.lt.u32.totalorder %s7911_s25, %s8546_s1 }
  0x64   : > { %p7473_p12 = scmp.ne.s32.totalorder %s7911_s25, %s7472_s16  ;;  %p7479_p9 = scmp.lt.u32.totalorder %s7477_s30, %s7472_s16 }
  0x65   : > { %s8547_s17 = scalar_select %p7924_p13, 1, 0 }
  0x66   : > { %p7475_p0 = pnand %p7924_p13, %p7473_p12  ;;  %p7480_p4 = por %p7479_p9, %p7478_p7 }
  0x67   : > { %p7481_p1 = scmp.lt.u32.totalorder %s7472_s16, %s7911_s25 }
  0x68   : > { %p7476_p2 = pneg %p7475_p0 }
  0x69   : > { %p7482_p3 = por %p7481_p1, %p7480_p4 }
  0x6b   : > { %p7483_p10 = pnand %p7482_p3, %p7476_p2 }
  0x6d   : > { %7486 = shalt.err (!%p7483_p10)
}
  0x6e   : > { %s7487_s13 = scalar_lea.vmem %s7914_s26, 128  ;;  %s7703_s18 = smov [#allocation5]  }
  0x6f   : > { %p7488_p12 = scmp.ne.s32.totalorder %s7914_s26, %s7487_s13  ;;  %s7492_s14 = sshll.u32 %s7703_s18, 4  ;;  %s7493_s14 = int_to_ptr.vmem [resolvable:$false] %s7492_s14 }
  0x70   : > { %s7494_s23 = scalar_lea.vmem %s7493_s14, 256  ;;  %p7495_p6 = scmp.lt.s32.totalorder %s7914_s26, %s7493_s14 }
  0x71   : > { %p7490_p0 = pnand %p7488_p12, %p7924_p13  ;;  %p7496_p8 = scmp.lt.s32.totalorder %s7494_s23, %s7487_s13 }
  0x73   : > { %p7491_p5 = pneg %p7490_p0  ;;  %p7497_p7 = por %p7496_p8, %p7495_p6 }
  0x75   : > { %p7498_p9 = pnand %p7497_p7, %p7491_p5 }
  0x77   : > { %7501 = shalt.err (!%p7498_p9)
}
  0x78   : > { %7335 = dma.hbm_to_vmem [thread:$0]  (!%p7902_p11), %s7911_s25, 128, %s7914_s26, %s7918_s19  }
  0x79   : > { %s7502_s3 = scalar_lea.hbm %s8499_s4, 512  ;;  %p8548_p3 = scmp.ne.s32.totalorder %s8537_s21, 0 }
  0x7a   : > { %p7503_p1 = scmp.ne.s32.totalorder %s8499_s4, %s7502_s3  ;;  %p7509_p5 = scmp.lt.u32.totalorder %s7502_s3, %s8499_s4 }
  0x7c   : > { %p7505_p6 = pnand %p7503_p1, %p8548_p3 }
  0x7e   : > { %p7506_p8 = pneg %p7505_p6 }
  0x80   : > { %p7511_p10 = pnand %p7509_p5, %p7506_p8 }
  0x82   : > { %7514 = shalt.err (!%p7511_p10)
}
  0x83   : > { %s7515_s23 = scalar_lea.vmem %s269_s5, 512  ;;  %p7523_p0 = scmp.lt.s32.totalorder %s269_s5, %s269_s5 }
  0x84   : > { %p7516_p2 = scmp.ne.s32.totalorder %s269_s5, %s7515_s23  ;;  %p7524_p7 = scmp.lt.s32.totalorder %s7515_s23, %s7515_s23 }
  0x86   : > { %p7518_p4 = pnand %p7516_p2, %p8548_p3  ;;  %p7525_p9 = por %p7524_p7, %p7523_p0 }
  0x88   : > { %p7519_p12 = pneg %p7518_p4 }
  0x8a   : > { %p7526_p11 = pnand %p7525_p9, %p7519_p12 }
  0x8c   : > { %7529 = shalt.err (!%p7526_p11)
}
  0x8d   : > { %p8549_p1 = scmp.ne.s32.totalorder %s8535_s15, 0  ;;  %s8550_s1 = smov 8  }
  0x8e   : > { %s8551_s25 = smov 128   ;;  %s7704_s16 = smov [#allocation13]  }
  0x8f   : > { %7322 = dma.hbm_to_vmem [thread:$0]  (!%p8549_p1), %s8499_s4, 512, %s269_s5, [#allocation9], %s8551_s25, %s8551_s25, %s8550_s1  }
  0x90   : > { %s294_s3 = sshll.u32 %s7704_s16, 4  ;;  %s7530_s14 = scalar_lea.hbm %s8501_s6, 512  ;;  %s295_s3 = int_to_ptr.vmem [resolvable:$true] %s294_s3 }
  0x91   : > { %p7531_p11 = scmp.ne.s32.totalorder %s8501_s6, %s7530_s14  ;;  %p7537_p5 = scmp.lt.u32.totalorder %s7530_s14, %s8501_s6 }
  0x93   : > { %p7533_p6 = pnand %p7531_p11, %p8548_p3 }
  0x95   : > { %p7534_p8 = pneg %p7533_p6 }
  0x97   : > { %p7539_p10 = pnand %p7537_p5, %p7534_p8 }
  0x99   : > { %7542 = shalt.err (!%p7539_p10)
}
  0x9a   : > { %s7543_s5 = scalar_lea.vmem %s295_s3, 512  ;;  %p7551_p0 = scmp.lt.s32.totalorder %s295_s3, %s295_s3 }
  0x9b   : > { %p7544_p2 = scmp.ne.s32.totalorder %s295_s3, %s7543_s5  ;;  %p7552_p7 = scmp.lt.s32.totalorder %s7543_s5, %s7543_s5 }
  0x9d   : > { %p7546_p4 = pnand %p7544_p2, %p8548_p3  ;;  %p7553_p9 = por %p7552_p7, %p7551_p0 }
  0x9f   : > { %p7547_p12 = pneg %p7546_p4 }
  0xa1   : > { %p7554_p13 = pnand %p7553_p9, %p7547_p12 }
  0xa3   : > { %7557 = shalt.err (!%p7554_p13)
}
  0xa4   : > { %7328 = dma.hbm_to_vmem [thread:$0]  (!%p8549_p1), %s8501_s6, 512, %s295_s3, [#allocation12], %s8551_s25, %s8551_s25, %s8550_s1  }
  0xa5   : > { %s7995_s26 = scalar_lea.hbm %s8495_s0, %s7900_s24  ;;  %s315_s15 = scalar_lea.vmem [#allocation2], %s7897_s10 }
  0xa6   : > { %s322_s30 = sshll.u32 %s315_s15, 4  ;;  %s8552_s16 = sand.u32 1, %s7692_s29   ;;  %s323_s30 = int_to_ptr.vmem [resolvable:$true] %s322_s30 }
  0xa7   : > { %s312_s18 = scalar_lea.sflag [#allocation3], %s8552_s16  ;;  %s7558_s13 = scalar_lea.hbm %s7995_s26, 128 }
  0xa8   : > { %p7559_p13 = scmp.ne.s32.totalorder %s7995_s26, %s7558_s13  ;;  %p8553_p3 = scmp.ne.s32.totalorder %s8547_s17, 0 }
  0xa9   : > { %s7563_s3 = scalar_lea.hbm %s8495_s0, 256  ;;  %p7564_p1 = scmp.lt.u32.totalorder %s7995_s26, %s8495_s0 }
  0xaa   : > { %p7561_p11 = pnand %p7559_p13, %p8553_p3  ;;  %p7565_p8 = scmp.lt.u32.totalorder %s7563_s3, %s7558_s13 }
  0xab   : > { %p7567_p10 = scmp.lt.u32.totalorder %s7558_s13, %s7995_s26 }
  0xac   : > { %p7562_p6 = pneg %p7561_p11  ;;  %p7566_p5 = por %p7565_p8, %p7564_p1 }
  0xae   : > { %p7568_p2 = por %p7567_p10, %p7566_p5 }
  0xb0   : > { %p7569_p4 = pnand %p7568_p2, %p7562_p6 }
  0xb2   : > { %7572 = shalt.err (!%p7569_p4)
}
  0xb3   : > { %s7573_s5 = scalar_lea.vmem %s323_s30, 128  ;;  %s7705_s7 = smov [#allocation2]  }
  0xb4   : > { %p7574_p12 = scmp.ne.s32.totalorder %s323_s30, %s7573_s5  ;;  %s7578_s8 = sshll.u32 %s7705_s7, 4  ;;  %s7579_s8 = int_to_ptr.vmem [resolvable:$false] %s7578_s8 }
  0xb5   : > { %s7580_s27 = scalar_lea.vmem %s7579_s8, 256  ;;  %p7581_p9 = scmp.lt.s32.totalorder %s323_s30, %s7579_s8 }
  0xb6   : > { %p7576_p0 = pnand %p7574_p12, %p8553_p3  ;;  %p7582_p13 = scmp.lt.s32.totalorder %s7580_s27, %s7573_s5 }
  0xb8   : > { %p7577_p7 = pneg %p7576_p0  ;;  %p7583_p11 = por %p7582_p13, %p7581_p9 }
  0xba   : > { %p7584_p1 = pnand %p7583_p11, %p7577_p7 }
  0xbc   : > { %7587 = shalt.err (!%p7584_p1)
}
  0xbd   : > { %p8554_p8 = scmp.ne.s32.totalorder %s8545_s9, 0  ;;  %s8021_s16 = scalar_lea.hbm %s8497_s2, %s7900_s24 }
  0xbe   : > { %s351_s13 = scalar_lea.vmem [#allocation7], %s7897_s10  ;;  %s7588_s25 = scalar_lea.hbm %s8021_s16, 128 }
  0xbf   : > { %7332 = dma.hbm_to_vmem [thread:$0]  (!%p8554_p8), %s7995_s26, 128, %s323_s30, %s312_s18  }
  0xc0   : > { %s358_s1 = sshll.u32 %s351_s13, 4  ;;  %p7589_p6 = scmp.ne.s32.totalorder %s8021_s16, %s7588_s25  ;;  %s359_s1 = int_to_ptr.vmem [resolvable:$true] %s358_s1 }
  0xc1   : > { %s7593_s26 = scalar_lea.hbm %s8497_s2, 256  ;;  %p7594_p2 = scmp.lt.u32.totalorder %s8021_s16, %s8497_s2 }
  0xc2   : > { %p7591_p5 = pnand %p7589_p6, %p8553_p3  ;;  %p7595_p4 = scmp.lt.u32.totalorder %s7593_s26, %s7588_s25 }
  0xc3   : > { %p7597_p0 = scmp.lt.u32.totalorder %s7588_s25, %s8021_s16 }
  0xc4   : > { %p7592_p10 = pneg %p7591_p5  ;;  %p7596_p12 = por %p7595_p4, %p7594_p2 }
  0xc6   : > { %p7598_p7 = por %p7597_p0, %p7596_p12 }
  0xc8   : > { %p7599_p9 = pnand %p7598_p7, %p7592_p10 }
  0xca   : > { %7602 = shalt.err (!%p7599_p9)
}
  0xcb   : > { %s7603_s10 = scalar_lea.vmem %s359_s1, 128  ;;  %s7706_s24 = smov [#allocation7]  }
  0xcc   : > { %p7604_p13 = scmp.ne.s32.totalorder %s359_s1, %s7603_s10  ;;  %s7608_s23 = sshll.u32 %s7706_s24, 4  ;;  %s7609_s23 = int_to_ptr.vmem [resolvable:$false] %s7608_s23 }
  0xcd   : > { %s7610_s5 = scalar_lea.vmem %s7609_s23, 256  ;;  %p7611_p6 = scmp.lt.s32.totalorder %s359_s1, %s7609_s23 }
  0xce   : > { %p7606_p11 = pnand %p7604_p13, %p8553_p3  ;;  %p7612_p5 = scmp.lt.s32.totalorder %s7610_s5, %s7603_s10 }
  0xd0   : > { %p7607_p1 = pneg %p7606_p11  ;;  %p7613_p8 = por %p7612_p5, %p7611_p6 }
  0xd2   : > { %p7614_p2 = pnand %p7613_p8, %p7607_p1 }
  0xd4   : > { %7617 = shalt.err (!%p7614_p2)
}
  0xd5   : > { %p8555_p4 = scmp.ne.s32.totalorder %s8545_s9, 0  ;;  %p8556_p10 = scmp.ne.s32.totalorder %s8534_s12, 0 }
  0xd6   : > { %s8045_s17 = sand.u32 (!%p8556_p10), 1, %s7688_s28   ;;  %p8557_p3 = scmp.ne.s32.totalorder (!%p8556_p10), %s8541_s20, 0 }
  0xd7   : > { %7338 = dma.hbm_to_vmem [thread:$0]  (!%p8555_p4), %s8021_s16, 128, %s359_s1, %s7918_s19  }
  0xd8   : > { %367 = sbr.rel (%p8556_p10) target bundleno = 1961 (0x7a9), region = 52  ;;  %s8048_s7 = sshll.u32 (!%p8556_p10), %s8045_s17, 3 }
  0xd9   : > { %s370_s8 = scalar_lea.sflag (!%p8556_p10), [#allocation3], %s8045_s17  ;;  %s373_s27 = scalar_lea.vmem (!%p8556_p10), [#allocation2], %s8048_s7 }
  0xdf   : > { %7663 = dma.done.wait (%p8557_p3), %s370_s8, 128  }
  0xe0   : > { %7665 = vsyncadd (%p8557_p3), %s370_s8, 4294967168  ;;  %s378_s12 = sand.u32 1, %s7783_s11   ;;  %s382_s9 = scalar_lea.vmem [#allocation5], %s8048_s7 }
  0xe1   : > { %s379_s19 = scalar_lea.sflag [#allocation6], %s378_s12 }
  0xe2   : > { %7667 = dma.done.wait (%p8557_p3), %s379_s19, 256  }
  0xe3   : > { %7669 = vsyncadd (%p8557_p3), %s379_s19, 4294967040  ;;  %s391_s21 = scalar_lea.vmem [#allocation7], %s8048_s7  ;;  %p8558_p8 = scmp.eq.s32.totalorder %s7783_s11, 0 }
  0xe5   : > { %7671 = dma.done.wait (%p8558_p8), [#allocation9], 1024   ;;  %p8559_p12 = pmov %p8558_p8 }
  0xe6   : > { %p8560_p0 = pmov %p8558_p8 }
  0xe7   : > { %7673 = vsyncadd (%p8559_p12), [#allocation9], 4294966272 }
  0xe8   : > { %7675 = dma.done.wait (%p8560_p0), [#allocation12], 1024   ;;  %p8561_p7 = pmov %p8560_p0 }
  0xe9   : > { %v7707_v0 = vmov 0.0|0.0   ;;  %vm7708_vm0 = vmmov 0   ;;  %v7709_v1 = vmov 0.0   ;;  %vm457_vm1 = vcmask 261120   ;;  %v453_v2 = vld [vmem:[#allocation8] sm:$0xff]  ;;  %v454_v3 = vld [vmem:[#allocation8 + $0x8] sm:$0xff] }
  0xea   : > { %7677 = vsyncadd (%p8561_p7), [#allocation12], 4294966272  ;;  %7028 = vmatprep.subr.bf16.mxu1 %v7707_v0  ;;  %7046 = vmatprep.subr.bf16.mxu0 %v7707_v0  ;;  %v455_v4 = vld [vmem:[#allocation8 + $0x10] sm:$0xff]  ;;  %v462_v5 = vand.u32 4294901760, %v453_v2  ;;  %v465_v6 = vand.u32 4294901760, %v454_v3  ;;  %v456_v7 = vld [vmem:[#allocation8 + $0x18] sm:$0xff] }
  0xeb   : > { %6532 = vmatprep.mubr.msk.f32.mxu1 %vm7708_vm0, %v7709_v1  ;;  %6565 = vmatprep.mubr.msk.f32.mxu0 %vm7708_vm0, %v7709_v1  ;;  %v468_v8 = vand.u32 4294901760, %v455_v4  ;;  %v450_v9 = vld [vmem:[%s373_s27] sm:$0xff]  ;;  %v471_v10 = vand.u32 4294901760, %v456_v7  ;;  %v946_v37 = vld [vmem:[#allocation10] sm:$0xff]  ;;  %v947_v38 = vld [vmem:[#allocation10 + $0x8] sm:$0xff]  ;;  %s7710_s20 = smov 112  }
  0xec   : > { %v459_v11 = vsel %vm457_vm1, %v450_v9, 0  ;;  %v7029_v12 = vpack.c.bf16 %v465_v6, %v462_v5  ;;  %v8078_v13 = vsub.f32 %v453_v2, %v462_v5  ;;  %v8080_v14 = vsub.f32 %v454_v3, %v465_v6  ;;  %v451_v39 = vld [vmem:[%s382_s9] sm:$0xff]  ;;  %v948_v45 = vld [vmem:[#allocation10 + $0x10] sm:$0xff]  ;;  %v949_v46 = vld [vmem:[#allocation10 + $0x18] sm:$0xff]  ;;  %s7711_s15 = smov 120   ;;  %s7712_s16 = smov 104  }
  0xed   : > { %v8082_v15 = vsub.f32 %v455_v4, %v468_v8  ;;  %v8084_v16 = vsub.f32 %v456_v7, %v471_v10  ;;  %v8086_v17 = vand.u32 4294901760, %v459_v11  ;;  %v8088_v18 = vpack.c.bf16 %v471_v10, %v468_v8  ;;  %s7713_s13 = smov 8   ;;  %s7714_s1 = smov 16  }
  0xee   : > { %7030 = vmatpush3.bf16.msra.mxu1 %v7029_v12  ;;  %7048 = vmatpush3.bf16.msra.mxu0 %v7029_v12  ;;  %v543_v19 = vand.u32 4294901760, %v8078_v13  ;;  %v550_v20 = vand.u32 4294901760, %v8080_v14  ;;  %v954_v42 = vand.u32 4294901760, %v946_v37  ;;  %v957_v43 = vand.u32 4294901760, %v947_v38  ;;  %s7715_s25 = smov 24   ;;  %s8562_s26 = sld [smem:[#allocation28_spill]] }
  0xef   : > { %v557_v21 = vand.u32 4294901760, %v8082_v15  ;;  %7031 = vmatprep.subr.bf16.mxu1 %v7707_v0  ;;  %7049 = vmatprep.subr.bf16.mxu0 %v7707_v0  ;;  %v8096_v22 = vsub.f32 %v459_v11, %v8086_v17  ;;  %v564_v23 = vand.u32 4294901760, %v8084_v16  ;;  %v951_v44 = vsel %vm457_vm1, %v451_v39, 0  ;;  %s6305_s30 = sshll.u32 %s7783_s11, 7  ;;  %s449_s18 = scalar_lea.vmem [#allocation14], %s8048_s7 }
  0xf0   : > { %v544_v24 = vsub.f32 %v8078_v13, %v543_v19  ;;  %v551_v25 = vsub.f32 %v8080_v14, %v550_v20  ;;  %v7053_v31 = vpack.c.bf16 %v550_v20, %v543_v19  ;;  %v7041_v47 = vpack.c.bf16 %v8080_v14, %v8078_v13  ;;  %v1439_v19 = vld [vmem:[#allocation11 + $0x8] sm:$0xff]  ;;  %v452_v20 = vld [vmem:[%s391_s21] sm:$0xff]  ;;  %s6130_s10 = sshll.u32 %s449_s18, 4  ;;  %s8563_s5 = sld [smem:[#allocation29_spill]]  ;;  %s8452_s10 = int_to_ptr.vmem [resolvable:$true] %s6130_s10 }
  0xf1   : > { %v558_v26 = vsub.f32 %v8082_v15, %v557_v21  ;;  %v532_v27 = vand.u32 4294901760, %v8096_v22  ;;  %v565_v28 = vsub.f32 %v8084_v16, %v564_v23  ;;  %v7056_v40 = vpack.c.bf16 %v564_v23, %v557_v21  ;;  %s6117_s27 = scalar_lea.sflag [#allocation4], %s8045_s17  ;;  %s7618_s12 = scalar_lea.vmem %s8452_s10, 128 }
  0xf2   : > { %7033 = vmatpush3.bf16.msra.mxu1 %v8088_v18  ;;  %7051 = vmatpush3.bf16.msra.mxu0 %v8088_v18  ;;  %v545_v29 = vand.u32 4294901760, %v544_v24  ;;  %v552_v30 = vand.u32 4294901760, %v551_v25  ;;  %v8121_v48 = vand.u32 4294901760, %v951_v44  ;;  %v8123_v49 = vsub.f32 %v946_v37, %v954_v42  ;;  %p7619_p9 = scmp.ne.s32.totalorder %s8452_s10, %s7618_s12  ;;  %p8564_p13 = scmp.ne.s32.totalorder %s8542_s22, 0 }
  0xf3   : > { %v533_v32 = vsub.f32 %v8096_v22, %v532_v27  ;;  %7034 = vmatprep.subr.bf16.mxu1 %v7707_v0  ;;  %7052 = vmatprep.subr.bf16.mxu0 %v7707_v0  ;;  %v559_v34 = vand.u32 4294901760, %v558_v26  ;;  %v566_v35 = vand.u32 4294901760, %v565_v28  ;;  %v8125_v50 = vsub.f32 %v947_v38, %v957_v43  ;;  %v1440_v28 = vld [vmem:[#allocation11 + $0x10] sm:$0xff]  ;;  %s7716_s11 = smov [#allocation14]  }
  0xf4   : > { %v7035_v33 = vpack.c.bf16 %v552_v30, %v545_v29  ;;  %v960_v51 = vand.u32 4294901760, %v948_v45  ;;  %v963_v52 = vand.u32 4294901760, %v949_v46  ;;  %v7044_v53 = vpack.c.bf16 %v8084_v16, %v8082_v15  ;;  %v1441_v29 = vld [vmem:[#allocation11 + $0x18] sm:$0xff]  ;;  %p7620_p11 = pnand %p7619_p9, %p8564_p13  ;;  %s7622_s7 = sshll.u32 %s7716_s11, 4  ;;  %s7623_s7 = int_to_ptr.vmem [resolvable:$false] %s7622_s7 }
  0xf5   : > { %v534_v36 = vand.u32 4294901760, %v533_v32  ;;  %6566 = vmatmul.mubr.f32.vlgmr.msra.gmra.mrb[0].mxu0 %v532_v27  ;;  %v7038_v41 = vpack.c.bf16 %v566_v35, %v559_v34  ;;  %v1023_v54 = vsub.f32 %v951_v44, %v8121_v48  ;;  %v1035_v57 = vand.u32 4294901760, %v8123_v49  ;;  %s7624_s19 = scalar_lea.vmem %s7623_s7, 256  ;;  %p7625_p6 = scmp.lt.s32.totalorder %s8452_s10, %s7623_s7 }
  0xf6   : > { %7054 = vmatpush3.bf16.msra.mxu0 %v7053_v31  ;;  %6576 = vmatprep.mubr.msk.f32.mxu0 %vm7708_vm0, %v7709_v1  ;;  %v1048_v55 = vsub.f32 %v948_v45, %v960_v51  ;;  %v1055_v56 = vsub.f32 %v949_v46, %v963_v52  ;;  %v1042_v58 = vand.u32 4294901760, %v8125_v50  ;;  %v7065_v59 = vpack.c.bf16 %v957_v43, %v954_v42  ;;  %s8450_s8 = scalar_lea.hbm %s8563_s5, %s6305_s30  ;;  %p7621_p1 = pneg %p7620_p11 }
  0xf7   : > { %6533 = vmatmul.mubr.f32.vlgmr.msra.gmra.mrb[0].mxu1 %v534_v36  ;;  %7055 = vmatprep.subr.bf16.mxu0 %v7707_v0  ;;  %v1024_v60 = vand.u32 4294901760, %v1023_v54  ;;  %v1036_v61 = vsub.f32 %v8123_v49, %v1035_v57  ;;  %v7068_v3 = vpack.c.bf16 %v963_v52, %v960_v51  ;;  %v7077_v14 = vpack.c.bf16 %v8125_v50, %v8123_v49  ;;  %p7626_p5 = scmp.lt.s32.totalorder %s7624_s19, %s7618_s12 }
  0xf8   : > { %7036 = vmatpush3.bf16.msra.mxu1 %v7035_v33  ;;  %6543 = vmatprep.mubr.msk.f32.mxu1 %vm7708_vm0, %v7709_v1  ;;  %v1043_v62 = vsub.f32 %v8125_v50, %v1042_v58  ;;  %v1049_v63 = vand.u32 4294901760, %v1048_v55  ;;  %v1056_v2 = vand.u32 4294901760, %v1055_v56  ;;  %v7080_v15 = vpack.c.bf16 %v1055_v56, %v1048_v55 }
  0xf9   : > { %7037 = vmatprep.subr.bf16.mxu1 %v7707_v0  ;;  %v1025_v4 = vsub.f32 %v1023_v54, %v1024_v60  ;;  %v1037_v5 = vand.u32 4294901760, %v1036_v61  ;;  %v7089_v16 = vpack.c.bf16 %v1042_v58, %v1035_v57  ;;  %v1443_v23 = vsel %vm457_vm1, %v452_v20, 0  ;;  %p7627_p2 = por %p7626_p5, %p7625_p6 }
  0xfa   : > { %7057 = vmatpush3.bf16.msra.mxu0 %v7056_v40  ;;  %v1044_v6 = vand.u32 4294901760, %v1043_v62  ;;  %v1050_v7 = vsub.f32 %v1048_v55, %v1049_v63  ;;  %v1057_v8 = vsub.f32 %v1055_v56, %v1056_v2  ;;  %v8184_v24 = vand.u32 4294901760, %v1443_v23 }
  0xfb   : > { %7058 = vmatprep.subr.bf16.mxu0 %v7707_v0  ;;  %v1026_v9 = vand.u32 4294901760, %v1025_v4  ;;  %v1452_v31 = vand.u32 4294901760, %v1440_v28  ;;  %v1455_v32 = vand.u32 4294901760, %v1441_v29  ;;  %vm1930_vm2 = vcmask 64512   ;;  %p7628_p4 = pnand %p7627_p2, %p7621_p1 }
  0xfc   : > { %7039 = vmatpush3.bf16.msra.mxu1 %v7038_v41  ;;  %v7071_v10 = vpack.c.bf16 %v1044_v6, %v1037_v5  ;;  %v1051_v11 = vand.u32 4294901760, %v1050_v7  ;;  %v1515_v30 = vsub.f32 %v1443_v23, %v8184_v24  ;;  %vm5612_vm3 = vcmask 130048  }
  0xfd   : > { %7040 = vmatprep.subr.bf16.mxu1 %v7707_v0  ;;  %6577 = vmatmul.mubr.f32.vlgmr.msra.gmra.mrb[0].mxu0 %v8086_v17  ;;  %v7104_v36 = vpack.c.bf16 %v1455_v32, %v1452_v31  ;;  %v1540_v37 = vsub.f32 %v1440_v28, %v1452_v31  ;;  %v1547_v38 = vsub.f32 %v1441_v29, %v1455_v32  ;;  %vm5614_vm4 = vcmask 195584  }
  0xfe   : > { %7060 = vmatpush3.bf16.msra.mxu0 %v7029_v12  ;;  %6587 = vmatprep.mubr.msk.f32.mxu0 %vm7708_vm0, %v7709_v1  ;;  %v1058_v12 = vand.u32 4294901760, %v1057_v8  ;;  %v1516_v35 = vand.u32 4294901760, %v1515_v30 }
  0xff   : > { %6544 = vmatmul.mubr.f32.vlgmr.msra.gmra.mrb[0].mxu1 %v8086_v17  ;;  %7061 = vmatprep.subr.bf16.mxu0 %v7707_v0  ;;  %v1541_v43 = vand.u32 4294901760, %v1540_v37  ;;  %v1548_v44 = vand.u32 4294901760, %v1547_v38 }
 0x100   : > { %7042 = vmatpush3.bf16.msra.mxu1 %v7041_v47  ;;  %6554 = vmatprep.mubr.msk.f32.mxu1 %vm7708_vm0, %v7709_v1  ;;  %v7074_v13 = vpack.c.bf16 %v1058_v12, %v1051_v11  ;;  %v1517_v40 = vsub.f32 %v1515_v30, %v1516_v35 }
 0x101   : > { %7043 = vmatprep.subr.bf16.mxu1 %v7707_v0  ;;  %v1542_v47 = vsub.f32 %v1540_v37, %v1541_v43  ;;  %v7128_v56 = vpack.c.bf16 %v1548_v44, %v1541_v43 }
 0x102   : > { %7063 = vmatpush3.bf16.msra.mxu0 %v8088_v18  ;;  %v1438_v18 = vld [vmem:[#allocation11] sm:$0xff]  ;;  %v1518_v45 = vand.u32 4294901760, %v1517_v40 }
 0x103   : > { %7100 = vmatprep.subr.bf16.mxu0 %v7707_v0  ;;  %v1446_v21 = vand.u32 4294901760, %v1438_v18  ;;  %v1543_v50 = vand.u32 4294901760, %v1542_v47 }
 0x104   : > { %7045 = vmatpush3.bf16.msra.mxu1 %v7044_v53 }
 0x105   : > { %6588 = vmatmul.mubr.f32.vlgmr.msra.gmra.mrb[0].mxu0 %v8086_v17  ;;  %7064 = vmatprep.subr.bf16.mxu1 %v7707_v0  ;;  %v7092_v17 = vpack.c.bf16 %v1056_v2, %v1049_v63  ;;  %v1526_v26 = vsub.f32 %v1438_v18, %v1446_v21 }
 0x106   : > { %6664 = vmatprep.mubr.msk.f32.mxu0 %vm7708_vm0, %v7709_v1 }
 0x107   : > { %6555 = vmatmul.mubr.f32.vlgmr.msra.gmra.mrb[0].mxu1 %v8096_v22  ;;  %v1449_v22 = vand.u32 4294901760, %v1439_v19  ;;  %v1527_v33 = vand.u32 4294901760, %v1526_v26 }
 0x108   : > { %7066 = vmatpush3.bf16.msra.mxu1 %v7065_v59  ;;  %6598 = vmatprep.mubr.msk.f32.mxu1 %vm7708_vm0, %v7709_v1 }
 0x109   : > { %7067 = vmatprep.subr.bf16.mxu1 %v7707_v0  ;;  %v7101_v25 = vpack.c.bf16 %v1449_v22, %v1446_v21  ;;  %v1533_v27 = vsub.f32 %v1439_v19, %v1449_v22  ;;  %v1528_v39 = vsub.f32 %v1526_v26, %v1527_v33 }
 0x10b   : > { %7102 = vmatpush3.bf16.msra.mxu0 %v7101_v25  ;;  %v1534_v34 = vand.u32 4294901760, %v1533_v27  ;;  %v1529_v42 = vand.u32 4294901760, %v1528_v39  ;;  %v7113_v53 = vpack.c.bf16 %v1533_v27, %v1526_v26 }
 0x10c   : > { %7069 = vmatpush3.bf16.msra.mxu1 %v7068_v3  ;;  %7103 = vmatprep.subr.bf16.mxu0 %v7707_v0 }
 0x10d   : > { %7070 = vmatprep.subr.bf16.mxu1 %v7707_v0  ;;  %v1535_v41 = vsub.f32 %v1533_v27, %v1534_v34  ;;  %v7125_v55 = vpack.c.bf16 %v1534_v34, %v1527_v33 }
 0x10f   : > { %6599 = vmatmul.mubr.f32.vlgmr.msra.gmra.mrb[2].mxu1 %v1026_v9  ;;  %7105 = vmatpush3.bf16.msra.mxu0 %v7104_v36  ;;  %v1536_v46 = vand.u32 4294901760, %v1535_v41 }
 0x110   : > { %7072 = vmatpush3.bf16.msra.mxu1 %v7071_v10  ;;  %6609 = vmatprep.mubr.msk.f32.mxu1 %vm7708_vm0, %v7709_v1 }
 0x111   : > { %7073 = vmatprep.subr.bf16.mxu1 %v7707_v0  ;;  %7106 = vmatprep.subr.bf16.mxu0 %v7707_v0  ;;  %v7107_v49 = vpack.c.bf16 %v1536_v46, %v1529_v42 }
 0x112   : > { %6665 = vmatmul.mubr.f32.vlgmr.msra.gmra.mrb[2].mxu0 %v1518_v45 }
 0x113   : > { %6675 = vmatprep.mubr.msk.f32.mxu0 %vm7708_vm0, %v7709_v1  ;;  %7108 = vmatpush3.bf16.msra.mxu0 %v7107_v49 }
 0x114   : > { %7075 = vmatpush3.bf16.msra.mxu1 %v7074_v13  ;;  %7109 = vmatprep.subr.bf16.mxu0 %v7707_v0 }
 0x115   : > { %7076 = vmatprep.subr.bf16.mxu1 %v7707_v0 }
 0x117   : > { %6610 = vmatmul.mubr.f32.vlgmr.msra.gmra.mrb[2].mxu1 %v8121_v48 }
 0x118   : > { %7078 = vmatpush3.bf16.msra.mxu1 %v7077_v14  ;;  %6620 = vmatprep.mubr.msk.f32.mxu1 %vm7708_vm0, %v7709_v1 }
 0x119   : > { %7079 = vmatprep.subr.bf16.mxu1 %v7707_v0 }
 0x11c   : > { %7081 = vmatpush3.bf16.msra.mxu1 %v7080_v15 }
 0x11d   : > { %7082 = vmatprep.subr.bf16.mxu1 %v7707_v0 }
 0x11f   : > { %6621 = vmatmul.mubr.f32.vlgmr.msra.gmra.mrb[2].mxu1 %v1023_v54  ;;  %v7116_v54 = vpack.c.bf16 %v1547_v38, %v1540_v37 }
 0x120   : > { %7084 = vmatpush3.bf16.msra.mxu1 %v7065_v59  ;;  %6631 = vmatprep.mubr.msk.f32.mxu1 %vm7708_vm0, %v7709_v1 }
 0x121   : > { %7085 = vmatprep.subr.bf16.mxu1 %v7707_v0 }
 0x124   : > { %7087 = vmatpush3.bf16.msra.mxu1 %v7068_v3 }
 0x125   : > { %7088 = vmatprep.subr.bf16.mxu1 %v7707_v0 }
 0x127   : > { %6632 = vmatmul.mubr.f32.vlgmr.msra.gmra.mrb[2].mxu1 %v1024_v60 }
 0x128   : > { %7090 = vmatpush3.bf16.msra.mxu1 %v7089_v16  ;;  %6642 = vmatprep.mubr.msk.f32.mxu1 %vm7708_vm0, %v7709_v1 }
 0x129   : > { %7091 = vmatprep.subr.bf16.mxu1 %v7707_v0 }
 0x12c   : > { %7093 = vmatpush3.bf16.msra.mxu1 %v7092_v17 }
 0x12d   : > { %7094 = vmatprep.subr.bf16.mxu1 %v7707_v0 }
 0x12f   : > { %6643 = vmatmul.mubr.f32.vlgmr.msra.gmra.mrb[2].mxu1 %v8121_v48 }
 0x130   : > { %7096 = vmatpush3.bf16.msra.mxu1 %v7065_v59  ;;  %6653 = vmatprep.mubr.msk.f32.mxu1 %vm7708_vm0, %v7709_v1 }
 0x131   : > { %7097 = vmatprep.subr.bf16.mxu1 %v7707_v0 }
 0x134   : > { %7099 = vmatpush3.bf16.msra.mxu1 %v7068_v3 }
 0x135   : > { %6722 = vmatprep.subr.mxu1 %v7709_v1 }
 0x137   : > { %6654 = vmatmul.mubr.f32.vlgmr.msra.gmra.mrb[2].mxu1 %v8121_v48  ;;  %v1549_v48 = vsub.f32 %v1547_v38, %v1548_v44 }
 0x138   : > { %6724 = vmatprep.mubr.msk.f32.mxu1 %vm7708_vm0, %v7709_v1 }
 0x139   : > { %v1550_v51 = vand.u32 4294901760, %v1549_v48 }
 0x13b   : > { %v7110_v52 = vpack.c.bf16 %v1550_v51, %v1543_v50 }
 0x13d   : > { %7111 = vmatpush3.bf16.msra.mxu0 %v7110_v52 }
 0x13e   : > { %7112 = vmatprep.subr.bf16.mxu0 %v7707_v0 }
 0x140   : > { %6676 = vmatmul.mubr.f32.vlgmr.msra.gmra.mrb[2].mxu0 %v8184_v24 }
 0x141   : > { %7114 = vmatpush3.bf16.msra.mxu0 %v7113_v53  ;;  %6686 = vmatprep.mubr.msk.f32.mxu0 %vm7708_vm0, %v7709_v1 }
 0x142   : > { %7115 = vmatprep.subr.bf16.mxu0 %v7707_v0 }
 0x145   : > { %7117 = vmatpush3.bf16.msra.mxu0 %v7116_v54 }
 0x146   : > { %7118 = vmatprep.subr.bf16.mxu0 %v7707_v0 }
 0x148   : > { %6687 = vmatmul.mubr.f32.vlgmr.msra.gmra.mrb[2].mxu0 %v1515_v30 }
 0x149   : > { %7120 = vmatpush3.bf16.msra.mxu0 %v7101_v25  ;;  %6697 = vmatprep.mubr.msk.f32.mxu0 %vm7708_vm0, %v7709_v1 }
 0x14a   : > { %7121 = vmatprep.subr.bf16.mxu0 %v7707_v0 }
 0x14d   : > { %7123 = vmatpush3.bf16.msra.mxu0 %v7104_v36 }
 0x14e   : > { %7124 = vmatprep.subr.bf16.mxu0 %v7707_v0 }
 0x150   : > { %6698 = vmatmul.mubr.f32.vlgmr.msra.gmra.mrb[2].mxu0 %v1516_v35 }
 0x151   : > { %7126 = vmatpush3.bf16.msra.mxu0 %v7125_v55  ;;  %6708 = vmatprep.mubr.msk.f32.mxu0 %vm7708_vm0, %v7709_v1 }
 0x152   : > { %7127 = vmatprep.subr.bf16.mxu0 %v7707_v0 }
 0x155   : > { %7129 = vmatpush3.bf16.msra.mxu0 %v7128_v56 }
 0x156   : > { %7130 = vmatprep.subr.bf16.mxu0 %v7707_v0 }
 0x158   : > { %6709 = vmatmul.mubr.f32.vlgmr.msra.gmra.mrb[2].mxu0 %v8184_v24 }
 0x159   : > { %7132 = vmatpush3.bf16.msra.mxu0 %v7101_v25  ;;  %6719 = vmatprep.mubr.msk.f32.mxu0 %vm7708_vm0, %v7709_v1 }
 0x15a   : > { %7133 = vmatprep.subr.bf16.mxu0 %v7707_v0 }
 0x15d   : > { %7135 = vmatpush3.bf16.msra.mxu0 %v7104_v36 }
 0x15e   : > { %6782 = vmatprep.subr.mxu0 %v7709_v1 }
 0x160   : > { %6720 = vmatmul.mubr.f32.vlgmr.msra.gmra.mrb[2].mxu0 %v8184_v24 }
 0x161   : > { %6784 = vmatprep.mubr.msk.f32.mxu0 %vm7708_vm0, %v7709_v1 }
 0x1d8   : > { %v942_v57 = vpop.f32.mrb[0].mxu0 }
 0x1d9   : > { %v6589_v58 = vpop.f32.mrb[1].mxu0 }
 0x1da   : > { %v707_v59 = vpop.f32.mrb[0].mxu1 }
 0x1db   : > { %v7172_v60 = vadd.f32 %v942_v57, %v707_v59  ;;  %v6556_v61 = vpop.f32.mrb[1].mxu1 }
 0x1dd   : > { %3763 = vrot.lane.b32.xlu1 %v7172_v60, %s7710_s20  ;;  %2844 = vrot.lane.b32.xlu0 %v7172_v60, %s7711_s15  ;;  %v1932_v62 = vsel %vm1930_vm2, %v7172_v60, 0 }
 0x1de   : > { %v2003_v63 = vand.u32 4294901760, %v1932_v62 }
 0x1e0   : > { %v2004_v2 = vsub.f32 %v1932_v62, %v2003_v63 }
 0x1e2   : > { %v2005_v3 = vand.u32 4294901760, %v2004_v2 }
 0x1e4   : > { %v2006_v7 = vsub.f32 %v2004_v2, %v2005_v3 }
 0x1e6   : > { %v2007_v10 = vand.u32 4294901760, %v2006_v7 }
 0x20a   : > { %v1434_v4 = vpop.f32.mrb[2].mxu1 }
 0x20b   : > { %v1935_v5 = vsel %vm1930_vm2, %v1434_v4, 0  ;;  %3765 = vrot.lane.b32.xlu1 %v1434_v4, %s7710_s20  ;;  %2846 = vrot.lane.b32.xlu0 %v1434_v4, %s7711_s15  ;;  %v6655_v6 = vpop.f32.mrb[3].mxu1 }
 0x20c   : > { %v1938_v8 = vand.u32 4294901760, %v1935_v5 }
 0x20e   : > { %v2015_v9 = vsub.f32 %v1935_v5, %v1938_v8  ;;  %6723 = vmatpush3.xpose.msra.mxu1 %v1938_v8 }
 0x20f   : > { %4683 = vrot.lane.b32.xlu1 %v1434_v4, %s7712_s16  ;;  %4681 = vrot.lane.b32.xlu0 %v7172_v60, %s7712_s16 }
 0x210   : > { %6727 = vmatprep.subr.mxu1 %v7709_v1  ;;  %v2016_v11 = vand.u32 4294901760, %v2015_v9 }
 0x211   : > { %6725 = vmatmul.mubr.f32.vlgmr.msra.gmra.mrb[4].mxu1 %v2007_v10 }
 0x212   : > { %v2017_v12 = vsub.f32 %v2015_v9, %v2016_v11  ;;  %6729 = vmatprep.mubr.msk.f32.mxu1 %vm7708_vm0, %v7709_v1 }
 0x214   : > { %v2018_v13 = vand.u32 4294901760, %v2017_v12 }
 0x216   : > { %6728 = vmatpush3.xpose.msra.mxu1 %v2018_v13 }
 0x217   : > { %6732 = vmatprep.subr.mxu1 %v7709_v1 }
 0x219   : > { %6730 = vmatmul.mubr.f32.vlgmr.msra.gmra.mrb[4].mxu1 %v2003_v63 }
 0x21a   : > { %6733 = vmatpush3.xpose.msra.mxu1 %v2015_v9  ;;  %6734 = vmatprep.mubr.msk.f32.mxu1 %vm7708_vm0, %v7709_v1 }
 0x21b   : > { %6737 = vmatprep.subr.mxu1 %v7709_v1 }
 0x221   : > { %6735 = vmatmul.mubr.f32.vlgmr.msra.gmra.mrb[4].mxu1 %v2004_v2 }
 0x222   : > { %6738 = vmatpush3.xpose.msra.mxu1 %v1938_v8  ;;  %6739 = vmatprep.mubr.msk.f32.mxu1 %vm7708_vm0, %v7709_v1 }
 0x223   : > { %6742 = vmatprep.subr.mxu1 %v7709_v1 }
 0x229   : > { %6740 = vmatmul.mubr.f32.vlgmr.msra.gmra.mrb[4].mxu1 %v2005_v3 }
 0x22a   : > { %6743 = vmatpush3.xpose.msra.mxu1 %v2016_v11  ;;  %6744 = vmatprep.mubr.msk.f32.mxu1 %vm7708_vm0, %v7709_v1 }
 0x22b   : > { %6747 = vmatprep.subr.mxu1 %v7709_v1 }
 0x231   : > { %6745 = vmatmul.mubr.f32.vlgmr.msra.gmra.mrb[4].mxu1 %v2003_v63 }
 0x232   : > { %6748 = vmatpush3.xpose.msra.mxu1 %v1938_v8  ;;  %6749 = vmatprep.mubr.msk.f32.mxu1 %vm7708_vm0, %v7709_v1 }
 0x233   : > { %6752 = vmatprep.subr.mxu1 %v7709_v1  ;;  %v8260_v38 = vpop.f32.mrb[2].mxu0 }
 0x234   : > { %v6721_v39 = vpop.f32.mrb[3].mxu0  ;;  %v8263_v40 = vand.u32 4294901760, %v8260_v38 }
 0x239   : > { %6750 = vmatmul.mubr.f32.vlgmr.msra.gmra.mrb[4].mxu1 %v2003_v63 }
 0x23a   : > { %6754 = vmatprep.mubr.msk.f32.mxu1 %vm7708_vm0, %v7709_v1  ;;  %6753 = vmatpush3.msra.mxu1 %v8263_v40 }
 0x23b   : > { %6757 = vmatprep.subr.mxu1 %v7709_v1 }
 0x24f   : > { %v2845_v14 = vpop.permute.xlu0 %2844  ;;  %v3764_v28 = vpop.permute.xlu1 %3763 }
 0x250   : > { %v2848_v15 = vsel %vm1930_vm2, %v2845_v14, 0  ;;  %v3767_v30 = vsel %vm1930_vm2, %v3764_v28, 0 }
 0x251   : > { %v2918_v16 = vand.u32 4294901760, %v2848_v15  ;;  %v3837_v32 = vand.u32 4294901760, %v3767_v30 }
 0x253   : > { %v2919_v17 = vsub.f32 %v2848_v15, %v2918_v16  ;;  %v3838_v34 = vsub.f32 %v3767_v30, %v3837_v32 }
 0x255   : > { %v2920_v18 = vand.u32 4294901760, %v2919_v17  ;;  %v3839_v36 = vand.u32 4294901760, %v3838_v34 }
 0x257   : > { %v2921_v20 = vsub.f32 %v2919_v17, %v2920_v18  ;;  %v3840_v41 = vsub.f32 %v3838_v34, %v3839_v36 }
 0x259   : > { %v2922_v24 = vand.u32 4294901760, %v2921_v20  ;;  %v3841_v43 = vand.u32 4294901760, %v3840_v41 }
 0x27d   : > { %v2847_v19 = vpop.permute.xlu0 %2846  ;;  %v3766_v29 = vpop.permute.xlu1 %3765 }
 0x27e   : > { %v2850_v21 = vsel %vm1930_vm2, %v2847_v19, 0  ;;  %v3769_v31 = vsel %vm1930_vm2, %v3766_v29, 0  ;;  %v2476_v29 = vsub.f32 %v8260_v38, %v8263_v40 }
 0x27f   : > { %v2853_v22 = vand.u32 4294901760, %v2850_v21  ;;  %v3772_v33 = vand.u32 4294901760, %v3769_v31 }
 0x281   : > { %v2930_v23 = vsub.f32 %v2850_v21, %v2853_v22  ;;  %6783 = vmatpush3.xpose.msra.mxu0 %v2853_v22  ;;  %v3849_v35 = vsub.f32 %v3769_v31, %v3772_v33  ;;  %v4682_v45 = vpop.permute.xlu0 %4681  ;;  %v4684_v46 = vpop.permute.xlu1 %4683 }
 0x282   : > { %6787 = vmatprep.subr.mxu0 %v7709_v1  ;;  %v4685_v47 = vsel %vm1930_vm2, %v4682_v45, 0  ;;  %v4687_v48 = vsel %vm1930_vm2, %v4684_v46, 0 }
 0x283   : > { %v2931_v25 = vand.u32 4294901760, %v2930_v23  ;;  %v3850_v37 = vand.u32 4294901760, %v3849_v35  ;;  %v4755_v49 = vand.u32 4294901760, %v4685_v47  ;;  %v4690_v50 = vand.u32 4294901760, %v4687_v48 }
 0x284   : > { %6785 = vmatmul.mubr.f32.vlgmr.msra.gmra.mrb[4].mxu0 %v2922_v24 }
 0x285   : > { %v2932_v26 = vsub.f32 %v2930_v23, %v2931_v25  ;;  %6789 = vmatprep.mubr.msk.f32.mxu0 %vm7708_vm0, %v7709_v1  ;;  %v3851_v42 = vsub.f32 %v3849_v35, %v3850_v37  ;;  %v4756_v51 = vsub.f32 %v4685_v47, %v4755_v49  ;;  %v4767_v52 = vsub.f32 %v4687_v48, %v4690_v50 }
 0x287   : > { %v2933_v27 = vand.u32 4294901760, %v2932_v26  ;;  %v3852_v44 = vand.u32 4294901760, %v3851_v42  ;;  %v4757_v53 = vand.u32 4294901760, %v4756_v51  ;;  %v4768_v54 = vand.u32 4294901760, %v4767_v52 }
 0x289   : > { %6788 = vmatpush3.xpose.msra.mxu0 %v2933_v27  ;;  %v4758_v55 = vsub.f32 %v4756_v51, %v4757_v53  ;;  %v4769_v56 = vsub.f32 %v4767_v52, %v4768_v54 }
 0x28a   : > { %6792 = vmatprep.subr.mxu0 %v7709_v1 }
 0x28b   : > { %v4759_v57 = vand.u32 4294901760, %v4758_v55  ;;  %v4770_v58 = vand.u32 4294901760, %v4769_v56 }
 0x28c   : > { %6790 = vmatmul.mubr.f32.vlgmr.msra.gmra.mrb[4].mxu0 %v2918_v16 }
 0x28d   : > { %6793 = vmatpush3.xpose.msra.mxu0 %v2930_v23  ;;  %6794 = vmatprep.mubr.msk.f32.mxu0 %vm7708_vm0, %v7709_v1 }
 0x28e   : > { %6797 = vmatprep.subr.mxu0 %v7709_v1 }
 0x294   : > { %6795 = vmatmul.mubr.f32.vlgmr.msra.gmra.mrb[4].mxu0 %v2919_v17 }
 0x295   : > { %6798 = vmatpush3.xpose.msra.mxu0 %v2853_v22  ;;  %6799 = vmatprep.mubr.msk.f32.mxu0 %vm7708_vm0, %v7709_v1 }
 0x296   : > { %6802 = vmatprep.subr.mxu0 %v7709_v1 }
 0x29c   : > { %6800 = vmatmul.mubr.f32.vlgmr.msra.gmra.mrb[4].mxu0 %v2920_v18 }
 0x29d   : > { %6803 = vmatpush3.xpose.msra.mxu0 %v2931_v25  ;;  %6804 = vmatprep.mubr.msk.f32.mxu0 %vm7708_vm0, %v7709_v1 }
 0x29e   : > { %6807 = vmatprep.subr.mxu0 %v7709_v1 }
 0x2a4   : > { %6805 = vmatmul.mubr.f32.vlgmr.msra.gmra.mrb[4].mxu0 %v2918_v16 }
 0x2a5   : > { %6808 = vmatpush3.xpose.msra.mxu0 %v2853_v22  ;;  %6809 = vmatprep.mubr.msk.f32.mxu0 %vm7708_vm0, %v7709_v1 }
 0x2a6   : > { %6842 = vmatprep.subr.mxu0 %v7709_v1 }
 0x2ac   : > { %6810 = vmatmul.mubr.f32.vlgmr.msra.gmra.mrb[4].mxu0 %v2918_v16 }
 0x2ad   : > { %6843 = vmatpush3.xpose.msra.mxu0 %v3772_v33  ;;  %6844 = vmatprep.mubr.msk.f32.mxu0 %vm7708_vm0, %v7709_v1 }
 0x2ae   : > { %6847 = vmatprep.subr.mxu0 %v7709_v1 }
 0x2b0   : > { %6845 = vmatmul.mubr.f32.vlgmr.msra.gmra.mrb[6].mxu0 %v3841_v43 }
 0x2b1   : > { %6848 = vmatpush3.xpose.msra.mxu0 %v3852_v44  ;;  %6849 = vmatprep.mubr.msk.f32.mxu0 %vm7708_vm0, %v7709_v1 }
 0x2b2   : > { %6852 = vmatprep.subr.mxu0 %v7709_v1 }
 0x2b8   : > { %6850 = vmatmul.mubr.f32.vlgmr.msra.gmra.mrb[6].mxu0 %v3837_v32 }
 0x2b9   : > { %6853 = vmatpush3.xpose.msra.mxu0 %v3849_v35  ;;  %6854 = vmatprep.mubr.msk.f32.mxu0 %vm7708_vm0, %v7709_v1 }
 0x2ba   : > { %6857 = vmatprep.subr.mxu0 %v7709_v1 }
 0x2c0   : > { %6855 = vmatmul.mubr.f32.vlgmr.msra.gmra.mrb[6].mxu0 %v3838_v34 }
 0x2c1   : > { %6858 = vmatpush3.xpose.msra.mxu0 %v3772_v33  ;;  %6859 = vmatprep.mubr.msk.f32.mxu0 %vm7708_vm0, %v7709_v1 }
 0x2c2   : > { %6862 = vmatprep.subr.mxu0 %v7709_v1 }
 0x2c8   : > { %6860 = vmatmul.mubr.f32.vlgmr.msra.gmra.mrb[6].mxu0 %v3839_v36 }
 0x2c9   : > { %6863 = vmatpush3.xpose.msra.mxu0 %v3850_v37  ;;  %6864 = vmatprep.mubr.msk.f32.mxu0 %vm7708_vm0, %v7709_v1 }
 0x2ca   : > { %6867 = vmatprep.subr.mxu0 %v7709_v1 }
 0x2d0   : > { %6865 = vmatmul.mubr.f32.vlgmr.msra.gmra.mrb[6].mxu0 %v3837_v32 }
 0x2d1   : > { %6868 = vmatpush3.xpose.msra.mxu0 %v3772_v33  ;;  %6869 = vmatprep.mubr.msk.f32.mxu0 %vm7708_vm0, %v7709_v1 }
 0x2d2   : > { %6902 = vmatprep.subr.mxu0 %v7709_v1 }
 0x2d8   : > { %6870 = vmatmul.mubr.f32.vlgmr.msra.gmra.mrb[6].mxu0 %v3837_v32  ;;  %v2477_v32 = vand.u32 4294901760, %v2476_v29 }
 0x2d9   : > { %6903 = vmatpush3.xpose.msra.mxu0 %v4690_v50  ;;  %6904 = vmatprep.mubr.msk.f32.mxu0 %vm7708_vm0, %v7709_v1 }
 0x2da   : > { %6907 = vmatprep.subr.mxu0 %v7709_v1  ;;  %v2478_v37 = vsub.f32 %v2476_v29, %v2477_v32 }
 0x2dc   : > { %6905 = vmatmul.mubr.f32.vlgmr.msra.gmra.mrb[8].mxu0 %v4759_v57  ;;  %v2479_v42 = vand.u32 4294901760, %v2478_v37 }
 0x2dd   : > { %6908 = vmatpush3.xpose.msra.mxu0 %v4770_v58  ;;  %6909 = vmatprep.mubr.msk.f32.mxu0 %vm7708_vm0, %v7709_v1 }
 0x2de   : > { %6912 = vmatprep.subr.mxu0 %v7709_v1 }
 0x2e4   : > { %6910 = vmatmul.mubr.f32.vlgmr.msra.gmra.mrb[8].mxu0 %v4755_v49 }
 0x2e5   : > { %6913 = vmatpush3.xpose.msra.mxu0 %v4767_v52  ;;  %6914 = vmatprep.mubr.msk.f32.mxu0 %vm7708_vm0, %v7709_v1 }
 0x2e6   : > { %6917 = vmatprep.subr.mxu0 %v7709_v1 }
 0x2ec   : > { %6915 = vmatmul.mubr.f32.vlgmr.msra.gmra.mrb[8].mxu0 %v4756_v51 }
 0x2ed   : > { %6918 = vmatpush3.xpose.msra.mxu0 %v4690_v50  ;;  %6919 = vmatprep.mubr.msk.f32.mxu0 %vm7708_vm0, %v7709_v1 }
 0x2ee   : > { %6922 = vmatprep.subr.mxu0 %v7709_v1 }
 0x2f4   : > { %6920 = vmatmul.mubr.f32.vlgmr.msra.gmra.mrb[8].mxu0 %v4757_v53 }
 0x2f5   : > { %6923 = vmatpush3.xpose.msra.mxu0 %v4768_v54  ;;  %6924 = vmatprep.mubr.msk.f32.mxu0 %vm7708_vm0, %v7709_v1 }
 0x2f6   : > { %6927 = vmatprep.subr.mxu0 %v7709_v1 }
 0x2fc   : > { %6925 = vmatmul.mubr.f32.vlgmr.msra.gmra.mrb[8].mxu0 %v4755_v49 }
 0x2fd   : > { %6928 = vmatpush3.xpose.msra.mxu0 %v4690_v50  ;;  %6929 = vmatprep.mubr.msk.f32.mxu0 %vm7708_vm0, %v7709_v1 }
 0x2fe   : > { %7136 = vmatprep.subr.bf16.mxu0 %v7707_v0 }
 0x304   : > { %6930 = vmatmul.mubr.f32.vlgmr.msra.gmra.mrb[8].mxu0 %v4755_v49 }
 0x305   : > { %6970 = vmatprep.mubr.msk.f32.mxu0 %vm7708_vm0, %v7709_v1 }
 0x30c   : > { %v2379_v59 = vpop.f32.mrb[4].mxu1 }
 0x30d   : > { %v2383_v60 = vmul.f32 8.0, %v2379_v59  ;;  %v6751_v61 = vpop.f32.mrb[5].mxu1 }
 0x30f   : > { %v2384_v62 = vsel %vm1930_vm2, %v2383_v60, -inf }
 0x310   : > { %2385 = vmax.xlane.f32.xlu0 %v2384_v62 }
 0x37f   : > { %v3294_v63 = vpop.f32.mrb[4].mxu0 }
 0x380   : > { %v3298_v2 = vmul.f32 8.0, %v3294_v63  ;;  %v6811_v3 = vpop.f32.mrb[5].mxu0 }
 0x382   : > { %v3299_v4 = vsel %vm1930_vm2, %v3298_v2, -inf }
 0x383   : > { %3300 = vmax.xlane.f32.xlu1 %v3299_v4 }
 0x39d   : > { %v2386_v5 = vpop.xlane.xlu0 %2385 }
 0x39e   : > { %v2387_v6 = vsub.f32 %v2383_v60, %v2386_v5 }
 0x3a0   : > { %v2388_v7 = vmul.f32 1.442695, %v2387_v6 }
 0x3a2   : > { %7400 = vpow2.f32 %v2388_v7 }
 0x3ab   : > { %v4213_v8 = vpop.f32.mrb[6].mxu0 }
 0x3ac   : > { %v7401_v9 = vpop.eup %7400  ;;  %v6871_v10 = vpop.f32.mrb[7].mxu0  ;;  %v4217_v11 = vmul.f32 8.0, %v4213_v8 }
 0x3ad   : > { %v2390_v12 = vsel %vm1930_vm2, %v7401_v9, 0.0 }
 0x3ae   : > { %2391 = vadd.xlane.f32.xlu0 %v2390_v12  ;;  %v4218_v13 = vsel %vm1930_vm2, %v4217_v11, -inf }
 0x3b2   : > { %4219 = vmax.xlane.f32.xlu0 %v4218_v13 }
 0x3d7   : > { %v5131_v14 = vpop.f32.mrb[8].mxu0 }
 0x3d8   : > { %v5135_v15 = vmul.f32 8.0, %v5131_v14  ;;  %v6931_v16 = vpop.f32.mrb[9].mxu0 }
 0x3da   : > { %v5136_v17 = vsel %vm1930_vm2, %v5135_v15, -inf }
 0x3db   : > { %5137 = vmax.xlane.f32.xlu0 %v5136_v17 }
 0x410   : > { %v3301_v18 = vpop.xlane.xlu1 %3300 }
 0x411   : > { %v3302_v19 = vsub.f32 %v3298_v2, %v3301_v18 }
 0x413   : > { %v3303_v20 = vmul.f32 1.442695, %v3302_v19 }
 0x415   : > { %7402 = vpow2.f32 %v3303_v20 }
 0x41f   : > { %v8312_v21 = vpop.eup %7402 }
 0x420   : > { %v3305_v22 = vsel %vm1930_vm2, %v8312_v21, 0.0 }
 0x421   : > { %3306 = vadd.xlane.f32.xlu1 %v3305_v22 }
 0x432   : > { %3311 = vrot.lane.b32.xlu1 %v8260_v38, %s7711_s15 }
 0x43b   : > { %v2392_v23 = vpop.xlane.xlu0 %2391 }
 0x43c   : > { %7404 = vrcp.f32 %v2392_v23 }
 0x43f   : > { %v4220_v24 = vpop.xlane.xlu0 %4219 }
 0x440   : > { %v4221_v25 = vsub.f32 %v4217_v11, %v4220_v24 }
 0x442   : > { %v4222_v26 = vmul.f32 1.442695, %v4221_v25 }
 0x444   : > { %7406 = vpow2.f32 %v4222_v26 }
 0x446   : > { %v7405_v27 = vpop.eup %7404 }
 0x447   : > { %v2394_v28 = vmul.f32 %v7405_v27, %v7401_v9 }
 0x449   : > { %v2396_v30 = vsel %vm1930_vm2, %v2394_v28, 0 }
 0x44a   : > { %v2464_v31 = vand.u32 4294901760, %v2396_v30 }
 0x44c   : > { %v2465_v33 = vsub.f32 %v2396_v30, %v2464_v31 }
 0x44e   : > { %v8321_v34 = vpop.eup %7406  ;;  %v2466_v35 = vand.u32 4294901760, %v2465_v33 }
 0x44f   : > { %v4224_v36 = vsel %vm1930_vm2, %v8321_v34, 0.0 }
 0x450   : > { %4225 = vadd.xlane.f32.xlu0 %v4224_v36  ;;  %v2467_v39 = vsub.f32 %v2465_v33, %v2466_v35  ;;  %v5617_v36 = vld [vmem:[#allocation13 + $0x8] sm:$0xff] }
 0x452   : > { %v2468_v41 = vand.u32 4294901760, %v2467_v39  ;;  %v5634_v39 = vand.u32 4294901760, %v5617_v36 }
 0x454   : > { %6755 = vmatmul.mubr.f32.vlgmr.msra.gmra.mrb[6].mxu1 %v2468_v41 }
 0x455   : > { %6758 = vmatpush3.msra.mxu1 %v2479_v42  ;;  %6759 = vmatprep.mubr.msk.f32.mxu1 %vm7708_vm0, %v7709_v1 }
 0x456   : > { %6762 = vmatprep.subr.mxu1 %v7709_v1 }
 0x45c   : > { %6760 = vmatmul.mubr.f32.vlgmr.msra.gmra.mrb[6].mxu1 %v2464_v31 }
 0x45d   : > { %6763 = vmatpush3.msra.mxu1 %v2476_v29  ;;  %6764 = vmatprep.mubr.msk.f32.mxu1 %vm7708_vm0, %v7709_v1 }
 0x45e   : > { %6767 = vmatprep.subr.mxu1 %v7709_v1 }
 0x464   : > { %6765 = vmatmul.mubr.f32.vlgmr.msra.gmra.mrb[6].mxu1 %v2465_v33 }
 0x465   : > { %6768 = vmatpush3.msra.mxu1 %v8263_v40  ;;  %6769 = vmatprep.mubr.msk.f32.mxu1 %vm7708_vm0, %v7709_v1 }
 0x466   : > { %4229 = vrot.lane.b32.xlu0 %v8260_v38, %s7710_s20  ;;  %6772 = vmatprep.subr.mxu1 %v7709_v1 }
 0x468   : > { %v5138_v43 = vpop.xlane.xlu0 %5137 }
 0x469   : > { %v5139_v44 = vsub.f32 %v5135_v15, %v5138_v43  ;;  %v5718_v43 = vsub.f32 %v5617_v36, %v5634_v39 }
 0x46a   : > { %5147 = vrot.lane.b32.xlu0 %v8260_v38, %s7712_s16 }
 0x46b   : > { %v5140_v45 = vmul.f32 1.442695, %v5139_v44  ;;  %v5618_v44 = vld [vmem:[#allocation13 + $0x10] sm:$0xff] }
 0x46c   : > { %6770 = vmatmul.mubr.f32.vlgmr.msra.gmra.mrb[6].mxu1 %v2466_v35  ;;  %v5616_v35 = vld [vmem:[#allocation13] sm:$0xff] }
 0x46d   : > { %7408 = vpow2.f32 %v5140_v45  ;;  %6773 = vmatpush3.msra.mxu1 %v2477_v32  ;;  %6774 = vmatprep.mubr.msk.f32.mxu1 %vm7708_vm0, %v7709_v1  ;;  %v5631_v37 = vand.u32 4294901760, %v5616_v35  ;;  %v5619_v45 = vld [vmem:[#allocation13 + $0x18] sm:$0xff] }
 0x46e   : > { %6777 = vmatprep.subr.mxu1 %v7709_v1 }
 0x46f   : > { %v8409_v41 = vpack.c.bf16 %v5634_v39, %v5631_v37  ;;  %v5711_v42 = vsub.f32 %v5616_v35, %v5631_v37 }
 0x471   : > { %7138 = vmatpush3.bf16.msra.mxu0 %v8409_v41 }
 0x472   : > { %7139 = vmatprep.subr.bf16.mxu0 %v7707_v0 }
 0x474   : > { %6775 = vmatmul.mubr.f32.vlgmr.msra.gmra.mrb[6].mxu1 %v2464_v31 }
 0x475   : > { %6778 = vmatpush3.msra.mxu1 %v8263_v40  ;;  %6779 = vmatprep.mubr.msk.f32.mxu1 %vm7708_vm0, %v7709_v1 }
 0x476   : > { %6812 = vmatprep.subr.mxu1 %v7709_v1 }
 0x477   : > { %v8346_v46 = vpop.eup %7408 }
 0x478   : > { %v5142_v38 = vsel %vm1930_vm2, %v8346_v46, 0.0 }
 0x479   : > { %5143 = vadd.xlane.f32.xlu1 %v5142_v38  ;;  %v5640_v38 = vand.u32 4294901760, %v5619_v45 }
 0x47c   : > { %6780 = vmatmul.mubr.f32.vlgmr.msra.gmra.mrb[6].mxu1 %v2464_v31 }
 0x47d   : > { %6814 = vmatprep.mubr.msk.f32.mxu1 %vm7708_vm0, %v7709_v1 }
 0x4ae   : > { %v3307_v47 = vpop.xlane.xlu1 %3306 }
 0x4af   : > { %7410 = vrcp.f32 %v3307_v47  ;;  %v5712_v47 = vand.u32 4294901760, %v5711_v42 }
 0x4b2   : > { %v3312_v48 = vpop.permute.xlu1 %3311 }
 0x4b3   : > { %v3318_v49 = vand.u32 4294901760, %v3312_v48 }
 0x4b5   : > { %6813 = vmatpush3.msra.mxu1 %v3318_v49  ;;  %v3395_v51 = vsub.f32 %v3312_v48, %v3318_v49  ;;  %v5719_v48 = vand.u32 4294901760, %v5718_v43 }
 0x4b6   : > { %6817 = vmatprep.subr.mxu1 %v7709_v1 }
 0x4b7   : > { %v3396_v54 = vand.u32 4294901760, %v3395_v51 }
 0x4b9   : > { %v7411_v40 = vpop.eup %7410  ;;  %v3397_v57 = vsub.f32 %v3395_v51, %v3396_v54 }
 0x4ba   : > { %v3309_v50 = vmul.f32 %v7411_v40, %v8312_v21 }
 0x4bb   : > { %v3398_v60 = vand.u32 4294901760, %v3397_v57 }
 0x4bc   : > { %v3315_v52 = vsel %vm1930_vm2, %v3309_v50, 0  ;;  %v5732_v50 = vsub.f32 %v5619_v45, %v5640_v38 }
 0x4bd   : > { %v3383_v53 = vand.u32 4294901760, %v3315_v52 }
 0x4bf   : > { %v3384_v55 = vsub.f32 %v3315_v52, %v3383_v53  ;;  %v5720_v52 = vsub.f32 %v5718_v43, %v5719_v48 }
 0x4c1   : > { %v3385_v56 = vand.u32 4294901760, %v3384_v55 }
 0x4c3   : > { %v3386_v58 = vsub.f32 %v3384_v55, %v3385_v56 }
 0x4c5   : > { %v3387_v59 = vand.u32 4294901760, %v3386_v58 }
 0x4c7   : > { %6815 = vmatmul.mubr.f32.vlgmr.msra.gmra.mrb[8].mxu1 %v3387_v59 }
 0x4c8   : > { %6818 = vmatpush3.msra.mxu1 %v3398_v60  ;;  %6819 = vmatprep.mubr.msk.f32.mxu1 %vm7708_vm0, %v7709_v1 }
 0x4c9   : > { %6822 = vmatprep.subr.mxu1 %v7709_v1 }
 0x4cf   : > { %6820 = vmatmul.mubr.f32.vlgmr.msra.gmra.mrb[8].mxu1 %v3383_v53 }
 0x4d0   : > { %6823 = vmatpush3.msra.mxu1 %v3395_v51  ;;  %6824 = vmatprep.mubr.msk.f32.mxu1 %vm7708_vm0, %v7709_v1  ;;  %v5713_v51 = vsub.f32 %v5711_v42, %v5712_v47 }
 0x4d1   : > { %6827 = vmatprep.subr.mxu1 %v7709_v1 }
 0x4d7   : > { %6825 = vmatmul.mubr.f32.vlgmr.msra.gmra.mrb[8].mxu1 %v3384_v55  ;;  %v5733_v55 = vand.u32 4294901760, %v5732_v50 }
 0x4d8   : > { %6828 = vmatpush3.msra.mxu1 %v3318_v49  ;;  %6829 = vmatprep.mubr.msk.f32.mxu1 %vm7708_vm0, %v7709_v1 }
 0x4d9   : > { %6832 = vmatprep.subr.mxu1 %v7709_v1  ;;  %v5734_v59 = vsub.f32 %v5732_v50, %v5733_v55 }
 0x4dd   : > { %v4226_v61 = vpop.xlane.xlu0 %4225 }
 0x4de   : > { %7412 = vrcp.f32 %v4226_v61 }
 0x4df   : > { %6830 = vmatmul.mubr.f32.vlgmr.msra.gmra.mrb[8].mxu1 %v3385_v56  ;;  %v5721_v56 = vand.u32 4294901760, %v5720_v52 }
 0x4e0   : > { %6833 = vmatpush3.msra.mxu1 %v3396_v54  ;;  %6834 = vmatprep.mubr.msk.f32.mxu1 %vm7708_vm0, %v7709_v1 }
 0x4e1   : > { %6837 = vmatprep.subr.mxu1 %v7709_v1  ;;  %v4230_v62 = vpop.permute.xlu0 %4229 }
 0x4e2   : > { %v4236_v63 = vand.u32 4294901760, %v4230_v62 }
 0x4e4   : > { %v4313_v4 = vsub.f32 %v4230_v62, %v4236_v63 }
 0x4e5   : > { %v5148_v15 = vpop.permute.xlu0 %5147 }
 0x4e6   : > { %v4314_v7 = vand.u32 4294901760, %v4313_v4  ;;  %v5154_v17 = vand.u32 4294901760, %v5148_v15 }
 0x4e7   : > { %6835 = vmatmul.mubr.f32.vlgmr.msra.gmra.mrb[8].mxu1 %v3383_v53 }
 0x4e8   : > { %v7413_v2 = vpop.eup %7412  ;;  %6838 = vmatpush3.msra.mxu1 %v3318_v49  ;;  %6839 = vmatprep.mubr.msk.f32.mxu1 %vm7708_vm0, %v7709_v1  ;;  %v4315_v10 = vsub.f32 %v4313_v4, %v4314_v7  ;;  %v5231_v20 = vsub.f32 %v5148_v15, %v5154_v17 }
 0x4e9   : > { %v4228_v3 = vmul.f32 %v7413_v2, %v8321_v34  ;;  %6872 = vmatprep.subr.mxu1 %v7709_v1 }
 0x4ea   : > { %v4316_v13 = vand.u32 4294901760, %v4315_v10  ;;  %v5232_v23 = vand.u32 4294901760, %v5231_v20 }
 0x4eb   : > { %v4233_v5 = vsel %vm1930_vm2, %v4228_v3, 0  ;;  %v7149_v3 = vpack.c.bf16 %v5718_v43, %v5711_v42 }
 0x4ec   : > { %v4301_v6 = vand.u32 4294901760, %v4233_v5  ;;  %v5233_v26 = vsub.f32 %v5231_v20, %v5232_v23 }
 0x4ee   : > { %v4302_v8 = vsub.f32 %v4233_v5, %v4301_v6  ;;  %v5234_v28 = vand.u32 4294901760, %v5233_v26  ;;  %v7161_v5 = vpack.c.bf16 %v5719_v48, %v5712_v47 }
 0x4ef   : > { %6840 = vmatmul.mubr.f32.vlgmr.msra.gmra.mrb[8].mxu1 %v3383_v53  ;;  %v5714_v53 = vand.u32 4294901760, %v5713_v51 }
 0x4f0   : > { %6873 = vmatpush3.msra.mxu1 %v4236_v63  ;;  %6874 = vmatprep.mubr.msk.f32.mxu1 %vm7708_vm0, %v7709_v1  ;;  %v4303_v9 = vand.u32 4294901760, %v4302_v8 }
 0x4f1   : > { %6877 = vmatprep.subr.mxu1 %v7709_v1  ;;  %v7143_v61 = vpack.c.bf16 %v5721_v56, %v5714_v53 }
 0x4f2   : > { %v4304_v11 = vsub.f32 %v4302_v8, %v4303_v9 }
 0x4f4   : > { %v4305_v12 = vand.u32 4294901760, %v4304_v11 }
 0x4f6   : > { %6875 = vmatmul.mubr.f32.vlgmr.msra.gmra.mrb[10].mxu1 %v4305_v12 }
 0x4f7   : > { %6878 = vmatpush3.msra.mxu1 %v4316_v13  ;;  %6879 = vmatprep.mubr.msk.f32.mxu1 %vm7708_vm0, %v7709_v1 }
 0x4f8   : > { %6882 = vmatprep.subr.mxu1 %v7709_v1 }
 0x4fe   : > { %6880 = vmatmul.mubr.f32.vlgmr.msra.gmra.mrb[10].mxu1 %v4301_v6 }
 0x4ff   : > { %6883 = vmatpush3.msra.mxu1 %v4313_v4  ;;  %6884 = vmatprep.mubr.msk.f32.mxu1 %vm7708_vm0, %v7709_v1 }
 0x500   : > { %6887 = vmatprep.subr.mxu1 %v7709_v1 }
 0x506   : > { %v5144_v14 = vpop.xlane.xlu1 %5143  ;;  %6885 = vmatmul.mubr.f32.vlgmr.msra.gmra.mrb[10].mxu1 %v4302_v8 }
 0x507   : > { %7414 = vrcp.f32 %v5144_v14  ;;  %6888 = vmatpush3.msra.mxu1 %v4236_v63  ;;  %6889 = vmatprep.mubr.msk.f32.mxu1 %vm7708_vm0, %v7709_v1 }
 0x508   : > { %6892 = vmatprep.subr.mxu1 %v7709_v1 }
 0x50e   : > { %6890 = vmatmul.mubr.f32.vlgmr.msra.gmra.mrb[10].mxu1 %v4303_v9 }
 0x50f   : > { %6893 = vmatpush3.msra.mxu1 %v4314_v7  ;;  %6894 = vmatprep.mubr.msk.f32.mxu1 %vm7708_vm0, %v7709_v1 }
 0x510   : > { %6897 = vmatprep.subr.mxu1 %v7709_v1 }
 0x511   : > { %v7415_v16 = vpop.eup %7414 }
 0x512   : > { %v5146_v18 = vmul.f32 %v7415_v16, %v8346_v46  ;;  %v5637_v46 = vand.u32 4294901760, %v5618_v44 }
 0x514   : > { %v5151_v19 = vsel %vm1930_vm2, %v5146_v18, 0  ;;  %v8413_v49 = vpack.c.bf16 %v5640_v38, %v5637_v46  ;;  %v5725_v40 = vsub.f32 %v5618_v44, %v5637_v46 }
 0x515   : > { %v5219_v21 = vand.u32 4294901760, %v5151_v19 }
 0x516   : > { %6895 = vmatmul.mubr.f32.vlgmr.msra.gmra.mrb[10].mxu1 %v4301_v6  ;;  %7141 = vmatpush3.bf16.msra.mxu0 %v8413_v49  ;;  %v5726_v54 = vand.u32 4294901760, %v5725_v40  ;;  %v7152_v4 = vpack.c.bf16 %v5732_v50, %v5725_v40 }
 0x517   : > { %6898 = vmatpush3.msra.mxu1 %v4236_v63  ;;  %6899 = vmatprep.mubr.msk.f32.mxu1 %vm7708_vm0, %v7709_v1  ;;  %v5220_v22 = vsub.f32 %v5151_v19, %v5219_v21  ;;  %v5735_v63 = vand.u32 4294901760, %v5734_v59  ;;  %v6303_v19 = vld [vmem:[%s8562_s26] ss:$0 sm:$0xff] }
 0x518   : > { %6932 = vmatprep.subr.mxu1 %v7709_v1  ;;  %7142 = vmatprep.subr.bf16.mxu0 %v7707_v0  ;;  %v5727_v58 = vsub.f32 %v5725_v40, %v5726_v54 }
 0x519   : > { %v5221_v24 = vand.u32 4294901760, %v5220_v22 }
 0x51a   : > { %v5728_v62 = vand.u32 4294901760, %v5727_v58 }
 0x51b   : > { %v5222_v25 = vsub.f32 %v5220_v22, %v5221_v24 }
 0x51c   : > { %v7146_v2 = vpack.c.bf16 %v5735_v63, %v5728_v62 }
 0x51d   : > { %v5223_v27 = vand.u32 4294901760, %v5222_v25 }
 0x51e   : > { %6900 = vmatmul.mubr.f32.vlgmr.msra.gmra.mrb[10].mxu1 %v4301_v6  ;;  %v7164_v6 = vpack.c.bf16 %v5733_v55, %v5726_v54 }
 0x51f   : > { %6933 = vmatpush3.msra.mxu1 %v5154_v17  ;;  %6934 = vmatprep.mubr.msk.f32.mxu1 %vm7708_vm0, %v7709_v1 }
 0x520   : > { %6937 = vmatprep.subr.mxu1 %v7709_v1 }
 0x522   : > { %6935 = vmatmul.mubr.f32.vlgmr.msra.gmra.mrb[12].mxu1 %v5223_v27 }
 0x523   : > { %6938 = vmatpush3.msra.mxu1 %v5234_v28  ;;  %6939 = vmatprep.mubr.msk.f32.mxu1 %vm7708_vm0, %v7709_v1 }
 0x524   : > { %6942 = vmatprep.subr.mxu1 %v7709_v1 }
 0x52a   : > { %6940 = vmatmul.mubr.f32.vlgmr.msra.gmra.mrb[12].mxu1 %v5219_v21 }
 0x52b   : > { %6943 = vmatpush3.msra.mxu1 %v5231_v20  ;;  %6944 = vmatprep.mubr.msk.f32.mxu1 %vm7708_vm0, %v7709_v1 }
 0x52c   : > { %6947 = vmatprep.subr.mxu1 %v7709_v1 }
 0x532   : > { %6945 = vmatmul.mubr.f32.vlgmr.msra.gmra.mrb[12].mxu1 %v5220_v22 }
 0x533   : > { %6948 = vmatpush3.msra.mxu1 %v5154_v17  ;;  %6949 = vmatprep.mubr.msk.f32.mxu1 %vm7708_vm0, %v7709_v1 }
 0x534   : > { %6952 = vmatprep.subr.mxu1 %v7709_v1 }
 0x53a   : > { %6950 = vmatmul.mubr.f32.vlgmr.msra.gmra.mrb[12].mxu1 %v5221_v24 }
 0x53b   : > { %6953 = vmatpush3.msra.mxu1 %v5232_v23  ;;  %6954 = vmatprep.mubr.msk.f32.mxu1 %vm7708_vm0, %v7709_v1 }
 0x53c   : > { %6957 = vmatprep.subr.mxu1 %v7709_v1 }
 0x542   : > { %6955 = vmatmul.mubr.f32.vlgmr.msra.gmra.mrb[12].mxu1 %v5219_v21 }
 0x543   : > { %6958 = vmatpush3.msra.mxu1 %v5154_v17  ;;  %6959 = vmatprep.mubr.msk.f32.mxu1 %vm7708_vm0, %v7709_v1 }
 0x54a   : > { %6960 = vmatmul.mubr.f32.vlgmr.msra.gmra.mrb[12].mxu1 %v5219_v21 }
 0x54f   : > { %v2840_v29 = vpop.f32.mrb[6].mxu1 }
 0x550   : > { %v6781_v30 = vpop.f32.mrb[7].mxu1 }
 0x5c2   : > { %v3759_v31 = vpop.f32.mrb[8].mxu1 }
 0x5c3   : > { %5600 = vrot.lane.b32.xlu0 %v3759_v31, %s7713_s13  ;;  %v6841_v32 = vpop.f32.mrb[9].mxu1 }
 0x5f1   : > { %v4677_v33 = vpop.f32.mrb[10].mxu1 }
 0x5f2   : > { %5604 = vrot.lane.b32.xlu0 %v4677_v33, %s7714_s1  ;;  %v6901_v34 = vpop.f32.mrb[11].mxu1 }
 0x61d   : > { %v5595_v57 = vpop.f32.mrb[12].mxu1 }
 0x61e   : > { %5608 = vrot.lane.b32.xlu0 %v5595_v57, %s7715_s25  ;;  %v6961_v60 = vpop.f32.mrb[13].mxu1 }
 0x635   : > { %v5601_v7 = vpop.permute.xlu0 %5600 }
 0x636   : > { %v5611_v9 = vsel %vm1930_vm2, %v2840_v29, %v5601_v7 }
 0x664   : > { %v5605_v8 = vpop.permute.xlu0 %5604 }
 0x665   : > { %v5613_v10 = vsel %vm5612_vm3, %v5611_v9, %v5605_v8 }
 0x690   : > { %v5609_v11 = vpop.permute.xlu0 %5608 }
 0x691   : > { %v5615_v12 = vsel %vm5614_vm4, %v5613_v10, %v5609_v11 }
 0x692   : > { %v5628_v13 = vsel %vm457_vm1, %v5615_v12, 0 }
 0x693   : > { %v5699_v14 = vand.u32 4294901760, %v5628_v13 }
 0x695   : > { %v5700_v15 = vsub.f32 %v5628_v13, %v5699_v14 }
 0x697   : > { %v5701_v16 = vand.u32 4294901760, %v5700_v15 }
 0x699   : > { %v5702_v17 = vsub.f32 %v5700_v15, %v5701_v16 }
 0x69b   : > { %v5703_v18 = vand.u32 4294901760, %v5702_v17 }
 0x69d   : > { %6971 = vmatmul.mubr.f32.vlgmr.msra.gmra.mrb[10].mxu0 %v5703_v18 }
 0x69e   : > { %7144 = vmatpush3.bf16.msra.mxu0 %v7143_v61  ;;  %6981 = vmatprep.mubr.msk.f32.mxu0 %vm7708_vm0, %v7709_v1 }
 0x69f   : > { %7145 = vmatprep.subr.bf16.mxu0 %v7707_v0 }
 0x6a2   : > { %7147 = vmatpush3.bf16.msra.mxu0 %v7146_v2 }
 0x6a3   : > { %7148 = vmatprep.subr.bf16.mxu0 %v7707_v0 }
 0x6a5   : > { %6982 = vmatmul.mubr.f32.vlgmr.msra.gmra.mrb[10].mxu0 %v5699_v14 }
 0x6a6   : > { %7150 = vmatpush3.bf16.msra.mxu0 %v7149_v3  ;;  %6992 = vmatprep.mubr.msk.f32.mxu0 %vm7708_vm0, %v7709_v1 }
 0x6a7   : > { %7151 = vmatprep.subr.bf16.mxu0 %v7707_v0 }
 0x6aa   : > { %7153 = vmatpush3.bf16.msra.mxu0 %v7152_v4 }
 0x6ab   : > { %7154 = vmatprep.subr.bf16.mxu0 %v7707_v0 }
 0x6ad   : > { %6993 = vmatmul.mubr.f32.vlgmr.msra.gmra.mrb[10].mxu0 %v5700_v15 }
 0x6ae   : > { %7156 = vmatpush3.bf16.msra.mxu0 %v8409_v41  ;;  %7003 = vmatprep.mubr.msk.f32.mxu0 %vm7708_vm0, %v7709_v1 }
 0x6af   : > { %7157 = vmatprep.subr.bf16.mxu0 %v7707_v0 }
 0x6b2   : > { %7159 = vmatpush3.bf16.msra.mxu0 %v8413_v49 }
 0x6b3   : > { %7160 = vmatprep.subr.bf16.mxu0 %v7707_v0 }
 0x6b5   : > { %7004 = vmatmul.mubr.f32.vlgmr.msra.gmra.mrb[10].mxu0 %v5701_v16 }
 0x6b6   : > { %7162 = vmatpush3.bf16.msra.mxu0 %v7161_v5  ;;  %7014 = vmatprep.mubr.msk.f32.mxu0 %vm7708_vm0, %v7709_v1 }
 0x6b7   : > { %7163 = vmatprep.subr.bf16.mxu0 %v7707_v0 }
 0x6ba   : > { %7165 = vmatpush3.bf16.msra.mxu0 %v7164_v6 }
 0x6bb   : > { %7166 = vmatprep.subr.bf16.mxu0 %v7707_v0 }
 0x6bd   : > { %7015 = vmatmul.mubr.f32.vlgmr.msra.gmra.mrb[10].mxu0 %v5699_v14 }
 0x6be   : > { %7168 = vmatpush3.bf16.msra.mxu0 %v8409_v41  ;;  %7025 = vmatprep.mubr.msk.f32.mxu0 %vm7708_vm0, %v7709_v1 }
 0x6bf   : > { %7169 = vmatprep.subr.bf16.mxu0 %v7707_v0 }
 0x6c2   : > { %7171 = vmatpush3.bf16.msra.mxu0 %v8413_v49 }
 0x6c5   : > { %7026 = vmatmul.mubr.f32.vlgmr.msra.gmra.mrb[10].mxu0 %v5699_v14 }
 0x798   : > { %v6111_v20 = vpop.f32.mrb[10].mxu0 }
 0x799   : > { %v7173_v21 = vadd.f32 %v6303_v19, %v6111_v20  ;;  %v7027_v22 = vpop.f32.mrb[11].mxu0 }
 0x79b   : > { %6115 = vst.msk [vmem:[%s449_s18] sm:$0xff] %vm457_vm1, %v7173_v21 }
 0x79c   : > { %7631 = shalt.err (!%p7628_p4)
}
 0x79d   : > { %s7632_s17 = scalar_lea.hbm %s8450_s8, 128  ;;  %s7636_s20 = scalar_lea.hbm %s8563_s5, 256 }
 0x79e   : > { %p7633_p10 = scmp.ne.s32.totalorder %s8450_s8, %s7632_s17  ;;  %p7637_p12 = scmp.lt.u32.totalorder %s8450_s8, %s8563_s5 }
 0x79f   : > { %p7638_p0 = scmp.lt.u32.totalorder %s7636_s20, %s7632_s17  ;;  %p7640_p9 = scmp.lt.u32.totalorder %s7632_s17, %s8450_s8 }
 0x7a0   : > { %p7634_p3 = pnand %p7633_p10, %p8564_p13 }
 0x7a1   : > { %p7639_p7 = por %p7638_p0, %p7637_p12 }
 0x7a2   : > { %p7635_p8 = pneg %p7634_p3 }
 0x7a3   : > { %p7641_p11 = por %p7640_p9, %p7639_p7 }
 0x7a5   : > { %p7642_p1 = pnand %p7641_p11, %p7635_p8 }
 0x7a7   : > { %7645 = shalt.err (!%p7642_p1)
}
 0x7a8   : > { %7314 = dma.vmem_to_hbm [thread:$0]  (%p8564_p13), %s8452_s10, 128, %s8450_s8, %s6117_s27  }
 0x7a9 PF: > { %s8565_s13 = sld [smem:[#allocation20_spill]]  ;;  %s8566_s1 = sld [smem:[#allocation24_spill]] }
 0x7aa   : > { %s8567_s25 = sld [smem:[#allocation21_spill]] }
 0x7af   : > { %s6142_s3 = sand.u32 1, %s8565_s13   ;;  %p8568_p6 = scmp.ne.s32.totalorder %s8566_s1, 0 }
 0x7b0   : > { %p8569_p5 = scmp.ge.s32.totalorder %s8567_s25, 2  ;;  %s6143_s14 = scalar_lea.sflag [#allocation4], %s6142_s3 }
 0x7b2   : > { %p7340_p2 = pnand %p8569_p5, %p8568_p6 }
 0x7b4   : > { %7679 = dma.done.wait (!%p7340_p2), %s6143_s14, 128  }
 0x7b5   : > { %7681 = vsyncadd (!%p7340_p2), %s6143_s14, 4294967168  ;;  %s8570_s30 = sld [smem:[#allocation22_spill]]  ;;  %s8571_s26 = sld [smem:[#allocation23_spill]] }
 0x7b6   : > { %s8572_s27 = smov %s7688_s28  ;;  %s8573_s28 = smov %s7692_s29 }
 0x7bb   : > { %p26_p4 = scmp.ge.s32.totalorder %s8570_s30, 4   ;;  %s8574_s29 = smov %s8571_s26 }
 0x7bd   :  { %28 = sbr.rel (!%p26_p4) target bundleno = 15 (0xf), region = 137 }
 0x7c4   :  { %6148 = vsyncpa [#allocation3], 1 }
 0x7c5   :  { %6150 = vsyncpa [#allocation3 + $0x1], 1 }
 0x7c6   :  { %6151 = vsyncpa [#allocation6], 1 }
 0x7c7   :  { %6153 = vsyncpa [#allocation6 + $0x1], 1 }
 0x7c8   :  { %6154 = vsyncpa [#allocation9], 1 }
 0x7c9   :  { %6155 = vsyncpa [#allocation12], 1 }
 0x7ca   :  { %6156 = vsyncpa [#allocation4], 1 }
 0x7cb   :  { %6158 = vsyncpa [#allocation4 + $0x1], 1 }

</bundles_post_ra>
